<compile_context>
chip_gen: v7x
topology: tpu7x:2x2x1
jax: 0.10.0
libtpu: 0.0.40
codegen_flags: <defaults>
</compile_context>

<pallas_src>
import functools

import numpy as np
import jax
import jax.numpy as jnp
from jax.experimental import pallas as pl
from jax.experimental.pallas import tpu as pltpu


# ------------------------------------------------------------------ kernel ---
def _encoder_kernel(xs_ref, xt_ref,
                    small_ref,            # (3, D): [ln_gamma; ln_beta; b_out]
                    wqkv_ref, bqkv_ref,   # (D, 3D) bf16, (1, 3D) f32
                    wo_ref,               # (D, D) bf16
                    wc1_ref, wc2_ref,     # (D, 4D), (4D, D) bf16
                    wproj_ref,            # (3D, D) bf16
                    os_ref, ot_ref,
                    *, BB, L, D, H, K_WIN):
    f32 = jnp.float32
    bf16 = jnp.bfloat16
    M = BB * L

    xs3 = xs_ref[...].astype(f32)                 # (BB, L, D)
    xs = xs3.reshape(M, D)                        # flatten rows -> bigger MXU M

    gamma = small_ref[0:1, :]
    beta = small_ref[1:2, :]
    b_out = small_ref[2:3, :]

    # ---- LayerNorm(d_model), eps=1e-5, affine (one-pass variance) ----
    mu = jnp.mean(xs, axis=-1, keepdims=True)
    var = jnp.mean(xs * xs, axis=-1, keepdims=True) - mu * mu
    xs_n = (xs - mu) * jax.lax.rsqrt(var + 1e-5) * gamma + beta       # (M, D)

    # ---- multi-head self attention (fused QKV projection, bf16 matmuls) ----
    qkv = jnp.dot(xs_n.astype(bf16), wqkv_ref[...],
                  preferred_element_type=f32) + bqkv_ref[...]          # (M, 3D)
    q3 = qkv[:, 0:D].reshape(BB, L, D)
    k3 = qkv[:, D:2 * D].reshape(BB, L, D)
    v3 = qkv[:, 2 * D:3 * D].reshape(BB, L, D)

    dh = D // H
    scale = 1.0 / float(np.sqrt(D))               # matches reference (1/sqrt(d_model))
    heads = []
    for h in range(H):                            # static, small H
        lo, hi = h * dh, (h + 1) * dh
        qh = q3[:, :, lo:hi].astype(bf16)
        kh = k3[:, :, lo:hi].astype(bf16)
        vh = v3[:, :, lo:hi].astype(bf16)
        s = jnp.einsum('bqd,bkd->bqk', qh, kh,
                       preferred_element_type=f32) * scale             # (BB, L, L)
        s = s - jnp.max(s, axis=-1, keepdims=True)
        p = jnp.exp(s)
        p = p * pl.reciprocal(jnp.sum(p, axis=-1, keepdims=True), approx=True)
        heads.append(jnp.einsum('bqk,bkd->bqd', p.astype(bf16), vh,
                                preferred_element_type=f32))
    attn = jnp.concatenate(heads, axis=-1).reshape(M, D)
    attn = jnp.dot(attn.astype(bf16), wo_ref[...],
                   preferred_element_type=f32) + b_out

    xs1 = xs_n + attn        # residual on the layer-normed input (dropout = id)

    # ---- series_decomp: res = x - moving_avg(x), edge-replicated window ----
    def decomp_res(x3):                           # x3: (BB, L, D)
        pad = (K_WIN - 1) // 2
        front = x3[:, 0:1, :]
        back = x3[:, L - 1:L, :]
        padded = jnp.concatenate([front] * pad + [x3] + [back] * pad, axis=1)
        acc = padded[:, 0:L, :]
        for i in range(1, K_WIN):                 # K_WIN is small & static
            acc = acc + padded[:, i:i + L, :]
        return x3 - acc * (1.0 / K_WIN)

    xs2_3 = decomp_res(xs1.reshape(BB, L, D))
    xs2 = xs2_3.reshape(M, D)

    # ---- feed forward: relu(conv1(k=1)) -> conv2(k=1), no bias, dropout=id ----
    h1 = jnp.maximum(jnp.dot(xs2.astype(bf16), wc1_ref[...],
                             preferred_element_type=f32), 0.0)
    h2 = jnp.dot(h1.astype(bf16), wc2_ref[...], preferred_element_type=f32)

    os_ref[...] = decomp_res((xs2 + h2).reshape(BB, L, D)).astype(os_ref.dtype)

    # ---- trend branch: Conv1d(D, D, k=3, pad=1, circular), no bias ----
    xt3 = xt_ref[...].astype(f32)                                       # (BB, L, D)
    x_prev = jnp.concatenate([xt3[:, L - 1:L, :], xt3[:, 0:L - 1, :]], axis=1)
    x_next = jnp.concatenate([xt3[:, 1:L, :], xt3[:, 0:1, :]], axis=1)
    xcat = jnp.concatenate([x_prev, xt3, x_next], axis=-1)              # (BB, L, 3D)
    yt = jnp.dot(xcat.reshape(M, 3 * D).astype(bf16), wproj_ref[...],
                 preferred_element_type=f32)
    ot_ref[...] = yt.reshape(BB, L, D).astype(ot_ref.dtype)


# ----------------------------------------------------------------- wrapper ---
def multi_decomp_encoder_layer(x_s, x_t, params, *, window_size, n_heads=4,
                               block_b=None):
    B, L, D = x_s.shape
    (g, bln, wq, bq, wk, bk, wv, bv, wo, bo, wc1, wc2, wproj3) = params

    if block_b is None:
        # Fold batch into the tile but keep grid >= 2 (feeds both v7x TCs).
        block_b = B // 2 if (B % 2 == 0 and B >= 4) else 1
    assert B % block_b == 0
    grid = (B // block_b,)

    bf16 = jnp.bfloat16
    small = jnp.concatenate([g, bln, bo], axis=0)                  # (3, D) f32
    wqkv = jnp.concatenate([wq, wk, wv], axis=1).astype(bf16)      # (D, 3D)
    bqkv = jnp.concatenate([bq, bk, bv], axis=1)                   # (1, 3D) f32
    wproj = wproj3.reshape(3 * D, D).astype(bf16)                  # (3D, D)

    def rep(shape):
        return pl.BlockSpec(shape, lambda b, n=len(shape): (0,) * n)

    in_specs = [
        pl.BlockSpec((block_b, L, D), lambda b: (b, 0, 0)),        # x_s
        pl.BlockSpec((block_b, L, D), lambda b: (b, 0, 0)),        # x_t
        rep((3, D)),                                               # [gamma;beta;bo]
        rep((D, 3 * D)),                                           # fused Wqkv
        rep((1, 3 * D)),                                           # fused bqkv
        rep((D, D)),                                               # Wo
        rep((D, 4 * D)),                                           # conv1 (1x1)
        rep((4 * D, D)),                                           # conv2 (1x1)
        rep((3 * D, D)),                                           # circular conv taps
    ]
    out_specs = [pl.BlockSpec((block_b, L, D), lambda b: (b, 0, 0)),
                 pl.BlockSpec((block_b, L, D), lambda b: (b, 0, 0))]

    kernel = functools.partial(_encoder_kernel, BB=block_b, L=L, D=D,
                               H=n_heads, K_WIN=window_size)

    return pl.pallas_call(
        kernel,
        out_shape=(jax.ShapeDtypeStruct((B, L, D), x_s.dtype),
                   jax.ShapeDtypeStruct((B, L, D), x_t.dtype)),
        grid_spec=pltpu.PrefetchScalarGridSpec(
            num_scalar_prefetch=0,
            grid=grid,
            in_specs=in_specs,
            out_specs=out_specs),
        compiler_params=pltpu.CompilerParams(
            dimension_semantics=("parallel",)),
    )(x_s, x_t, small, wqkv, bqkv, wo.astype(bf16),
      wc1.astype(bf16), wc2.astype(bf16), wproj)


# --------------------------------------------------------- pure-JAX reference
def reference(x_s, x_t, params, *, window_size, n_heads=4):
    (g, bln, wq, bq, wk, bk, wv, bv, wo, bo, wc1, wc2, wproj) = params
    B, L, D = x_s.shape
    mu = x_s.mean(-1, keepdims=True)
    var = ((x_s - mu) ** 2).mean(-1, keepdims=True)
    xs_n = (x_s - mu) / jnp.sqrt(var + 1e-5) * g + bln

    q = xs_n @ wq + bq
    k = xs_n @ wk + bk
    v = xs_n @ wv + bv
    dh = D // n_heads
    qh = q.reshape(B, L, n_heads, dh).transpose(0, 2, 1, 3)
    kh = k.reshape(B, L, n_heads, dh).transpose(0, 2, 1, 3)
    vh = v.reshape(B, L, n_heads, dh).transpose(0, 2, 1, 3)
    s = jnp.einsum("bhqd,bhkd->bhqk", qh, kh) / jnp.sqrt(jnp.float32(D))
    p = jax.nn.softmax(s, axis=-1)
    o = jnp.einsum("bhqk,bhkd->bhqd", p, vh).transpose(0, 2, 1, 3).reshape(B, L, D)
    attn = o @ wo + bo
    xs1 = xs_n + attn

    def decomp_res(x):
        pad = (window_size - 1) // 2
        padded = jnp.concatenate(
            [jnp.repeat(x[:, :1], pad, axis=1), x, jnp.repeat(x[:, -1:], pad, axis=1)],
            axis=1)
        mean = jnp.stack([padded[:, i:i + L] for i in range(window_size)], 0).mean(0)
        return x - mean

    xs2 = decomp_res(xs1)
    h1 = jnp.maximum(xs2 @ wc1, 0.0)
    h2 = h1 @ wc2
    out_s = decomp_res(xs2 + h2)

    xp = jnp.roll(x_t, 1, axis=1)
    xn = jnp.roll(x_t, -1, axis=1)
    out_t = xp @ wproj[0] + x_t @ wproj[1] + xn @ wproj[2]
    return out_s, out_t


# -------------------------------------------------------------------- main ---
if __name__ == "__main__":
    # batch, input_len, d_model, heads, window_size
    # d_model = 128 keeps inputs/outputs lane-dense (full 128-lane stores).
    B, L, D, H, WIN = 4, 16, 128, 4, 5
    key = jax.random.PRNGKey(0)
    ks = jax.random.split(key, 20)

    def nrm(k, shape, s=0.05):
        return jax.random.normal(k, shape, jnp.float32) * s

    x_s = nrm(ks[0], (B, L, D), 1.0)
    x_t = nrm(ks[1], (B, L, D), 1.0)

    params = (
        jnp.ones((1, D), jnp.float32) + nrm(ks[2], (1, D)),        # layernorm gamma
        nrm(ks[3], (1, D)),                                        # layernorm beta
        nrm(ks[4], (D, D)), nrm(ks[5], (1, D)),                    # Wq, bq  (in, out)
        nrm(ks[6], (D, D)), nrm(ks[7], (1, D)),                    # Wk, bk
        nrm(ks[8], (D, D)), nrm(ks[9], (1, D)),                    # Wv, bv
        nrm(ks[10], (D, D)), nrm(ks[11], (1, D)),                  # Wo, bo
        nrm(ks[12], (D, 4 * D)),                                   # conv1 (1x1)
        nrm(ks[13], (4 * D, D)),                                   # conv2 (1x1)
        nrm(ks[14], (3, D, D)),                                    # circular conv taps
    )

    out_s, out_t = multi_decomp_encoder_layer(x_s, x_t, params,
                                              window_size=WIN, n_heads=H)
    jax.block_until_ready((out_s, out_t))

    ref_s, ref_t = reference(x_s, x_t, params, window_size=WIN, n_heads=H)
    # bf16 matmuls in the kernel vs f32 reference -> loose-but-meaningful tolerance
    np.testing.assert_allclose(np.asarray(out_s), np.asarray(ref_s), rtol=5e-2, atol=5e-2)
    np.testing.assert_allclose(np.asarray(out_t), np.asarray(ref_t), rtol=5e-2, atol=5e-2)

    print("KERNEL_OK")
</pallas_src>

<mosaic_0001>
module attributes {stable_mosaic.version = 11 : i64} {
  func.func @_encoder_kernel(%arg0: i32, %arg1: memref<2x16x128xf32, #tpu.memory_space<vmem>>, %arg2: memref<2x16x128xf32, #tpu.memory_space<vmem>>, %arg3: memref<3x128xf32, #tpu.memory_space<vmem>>, %arg4: memref<128x384xbf16, #tpu.memory_space<vmem>>, %arg5: memref<1x384xf32, #tpu.memory_space<vmem>>, %arg6: memref<128x128xbf16, #tpu.memory_space<vmem>>, %arg7: memref<128x512xbf16, #tpu.memory_space<vmem>>, %arg8: memref<512x128xbf16, #tpu.memory_space<vmem>>, %arg9: memref<384x128xbf16, #tpu.memory_space<vmem>>, %arg10: memref<2x16x128xf32, #tpu.memory_space<vmem>>, %arg11: memref<2x16x128xf32, #tpu.memory_space<vmem>>) attributes {dimension_semantics = [#tpu.dimension_semantics<parallel>], iteration_bounds = array<i64: 2>, scalar_prefetch = 0 : i64, scratch_operands = 0 : i64, tpu.core_type = #tpu.core_type<tc>, window_params = [{transform_indices = @transform_0, window_bounds = array<i64: 2, 16, 128>}, {transform_indices = @transform_1, window_bounds = array<i64: 2, 16, 128>}, {pipeline_mode = #tpu.pipeline_mode<synchronous>, transform_indices = @transform_2, window_bounds = array<i64: 3, 128>}, {pipeline_mode = #tpu.pipeline_mode<synchronous>, transform_indices = @transform_3, window_bounds = array<i64: 128, 384>}, {pipeline_mode = #tpu.pipeline_mode<synchronous>, transform_indices = @transform_4, window_bounds = array<i64: 1, 384>}, {pipeline_mode = #tpu.pipeline_mode<synchronous>, transform_indices = @transform_5, window_bounds = array<i64: 128, 128>}, {pipeline_mode = #tpu.pipeline_mode<synchronous>, transform_indices = @transform_6, window_bounds = array<i64: 128, 512>}, {pipeline_mode = #tpu.pipeline_mode<synchronous>, transform_indices = @transform_7, window_bounds = array<i64: 512, 128>}, {pipeline_mode = #tpu.pipeline_mode<synchronous>, transform_indices = @transform_8, window_bounds = array<i64: 384, 128>}, {transform_indices = @transform_9, window_bounds = array<i64: 2, 16, 128>}, {transform_indices = @transform_10, window_bounds = array<i64: 2, 16, 128>}]} {
    %c0 = arith.constant 0 : index
    %c0_0 = arith.constant 0 : index
    %c0_1 = arith.constant 0 : index
    %0 = vector.load %arg1[%c0, %c0_0, %c0_1] : memref<2x16x128xf32, #tpu.memory_space<vmem>>, vector<2x16x128xf32>
    %1 = vector.shape_cast %0 : vector<2x16x128xf32> to vector<32x128xf32>
    %c0_2 = arith.constant 0 : index
    %c0_3 = arith.constant 0 : index
    %2 = vector.load %arg3[%c0_2, %c0_3] : memref<3x128xf32, #tpu.memory_space<vmem>>, vector<1x128xf32>
    %c1 = arith.constant 1 : index
    %c0_4 = arith.constant 0 : index
    %3 = vector.load %arg3[%c1, %c0_4] : memref<3x128xf32, #tpu.memory_space<vmem>>, vector<1x128xf32>
    %c2 = arith.constant 2 : index
    %c0_5 = arith.constant 0 : index
    %4 = vector.load %arg3[%c2, %c0_5] : memref<3x128xf32, #tpu.memory_space<vmem>>, vector<1x128xf32>
    %cst = arith.constant dense<0.000000e+00> : vector<32xf32>
    %5 = vector.multi_reduction <add>, %1, %cst [1] : vector<32x128xf32> to vector<32xf32>
    %6 = vector.shape_cast %5 : vector<32xf32> to vector<32x1xf32>
    %cst_6 = arith.constant 1.280000e+02 : f32
    %7 = vector.broadcast %cst_6 : f32 to vector<32x1xf32>
    %8 = arith.divf %6, %7 : vector<32x1xf32>
    %9 = arith.mulf %1, %1 : vector<32x128xf32>
    %cst_7 = arith.constant dense<0.000000e+00> : vector<32xf32>
    %10 = vector.multi_reduction <add>, %9, %cst_7 [1] : vector<32x128xf32> to vector<32xf32>
    %11 = vector.shape_cast %10 : vector<32xf32> to vector<32x1xf32>
    %cst_8 = arith.constant 1.280000e+02 : f32
    %12 = vector.broadcast %cst_8 : f32 to vector<32x1xf32>
    %13 = arith.divf %11, %12 : vector<32x1xf32>
    %14 = arith.mulf %8, %8 : vector<32x1xf32>
    %15 = arith.subf %13, %14 : vector<32x1xf32>
    %16 = vector.broadcast %8 : vector<32x1xf32> to vector<32x128xf32>
    %17 = arith.subf %1, %16 : vector<32x128xf32>
    %cst_9 = arith.constant 9.99999974E-6 : f32
    %18 = vector.broadcast %cst_9 : f32 to vector<32x1xf32>
    %19 = arith.addf %15, %18 : vector<32x1xf32>
    %20 = math.rsqrt %19 : vector<32x1xf32>
    %21 = vector.broadcast %20 : vector<32x1xf32> to vector<32x128xf32>
    %22 = arith.mulf %17, %21 : vector<32x128xf32>
    %23 = vector.broadcast %2 : vector<1x128xf32> to vector<32x128xf32>
    %24 = arith.mulf %22, %23 : vector<32x128xf32>
    %25 = vector.broadcast %3 : vector<1x128xf32> to vector<32x128xf32>
    %26 = arith.addf %24, %25 : vector<32x128xf32>
    %27 = arith.truncf %26 : vector<32x128xf32> to vector<32x128xbf16>
    %c0_10 = arith.constant 0 : index
    %c0_11 = arith.constant 0 : index
    %28 = vector.load %arg4[%c0_10, %c0_11] : memref<128x384xbf16, #tpu.memory_space<vmem>>, vector<128x384xbf16>
    %cst_12 = arith.constant dense<0.000000e+00> : vector<32x384xf32>
    %29 = tpu.matmul %27, %28, %cst_12 {dimension_numbers = #tpu.dot_dimension_numbers<[1], [0], [0], [1], [0, 0, 1, 1], [], []>} : vector<32x128xbf16>, vector<128x384xbf16>, vector<32x384xf32> -> vector<32x384xf32>
    %c0_13 = arith.constant 0 : index
    %c0_14 = arith.constant 0 : index
    %30 = vector.load %arg5[%c0_13, %c0_14] : memref<1x384xf32, #tpu.memory_space<vmem>>, vector<1x384xf32>
    %31 = vector.broadcast %30 : vector<1x384xf32> to vector<32x384xf32>
    %32 = arith.addf %29, %31 : vector<32x384xf32>
    %33 = vector.extract_strided_slice %32 {offsets = [0, 0], sizes = [32, 128], strides = [1, 1]} : vector<32x384xf32> to vector<32x128xf32>
    %34 = vector.shape_cast %33 : vector<32x128xf32> to vector<2x16x128xf32>
    %35 = vector.extract_strided_slice %32 {offsets = [0, 128], sizes = [32, 128], strides = [1, 1]} : vector<32x384xf32> to vector<32x128xf32>
    %36 = vector.shape_cast %35 : vector<32x128xf32> to vector<2x16x128xf32>
    %37 = vector.extract_strided_slice %32 {offsets = [0, 256], sizes = [32, 128], strides = [1, 1]} : vector<32x384xf32> to vector<32x128xf32>
    %38 = vector.shape_cast %37 : vector<32x128xf32> to vector<2x16x128xf32>
    %39 = vector.extract_strided_slice %34 {offsets = [0, 0, 0], sizes = [2, 16, 32], strides = [1, 1, 1]} : vector<2x16x128xf32> to vector<2x16x32xf32>
    %40 = arith.truncf %39 : vector<2x16x32xf32> to vector<2x16x32xbf16>
    %41 = vector.extract_strided_slice %36 {offsets = [0, 0, 0], sizes = [2, 16, 32], strides = [1, 1, 1]} : vector<2x16x128xf32> to vector<2x16x32xf32>
    %42 = arith.truncf %41 : vector<2x16x32xf32> to vector<2x16x32xbf16>
    %43 = vector.extract_strided_slice %38 {offsets = [0, 0, 0], sizes = [2, 16, 32], strides = [1, 1, 1]} : vector<2x16x128xf32> to vector<2x16x32xf32>
    %44 = arith.truncf %43 : vector<2x16x32xf32> to vector<2x16x32xbf16>
    "tpu.trace_start"() <{level = 10 : i32, message = "bqd,bkd->bqk"}> : () -> ()
    %cst_15 = arith.constant dense<0.000000e+00> : vector<2x16x16xf32>
    %45 = tpu.matmul %40, %42, %cst_15 {dimension_numbers = #tpu.dot_dimension_numbers<[2], [2], [1], [1], [0, 0, 0, 1, 1, 1], [0], [0]>} : vector<2x16x32xbf16>, vector<2x16x32xbf16>, vector<2x16x16xf32> -> vector<2x16x16xf32>
    "tpu.trace_stop"() : () -> ()
    %cst_16 = arith.constant 0.0883883461 : f32
    %46 = vector.broadcast %cst_16 : f32 to vector<2x16x16xf32>
    %47 = arith.mulf %45, %46 : vector<2x16x16xf32>
    %cst_17 = arith.constant dense<0xFF800000> : vector<2x16xf32>
    %48 = vector.multi_reduction <maximumf>, %47, %cst_17 [2] : vector<2x16x16xf32> to vector<2x16xf32>
    %49 = vector.shape_cast %48 : vector<2x16xf32> to vector<2x16x1xf32>
    %50 = vector.broadcast %49 : vector<2x16x1xf32> to vector<2x16x16xf32>
    %51 = arith.subf %47, %50 : vector<2x16x16xf32>
    %52 = math.exp %51 : vector<2x16x16xf32>
    %cst_18 = arith.constant dense<0.000000e+00> : vector<2x16xf32>
    %53 = vector.multi_reduction <add>, %52, %cst_18 [2] : vector<2x16x16xf32> to vector<2x16xf32>
    %54 = vector.shape_cast %53 : vector<2x16xf32> to vector<2x16x1xf32>
    %55 = tpu.reciprocal %54 {approx = true} : vector<2x16x1xf32> -> vector<2x16x1xf32>
    %56 = vector.broadcast %55 : vector<2x16x1xf32> to vector<2x16x16xf32>
    %57 = arith.mulf %52, %56 : vector<2x16x16xf32>
    %58 = arith.truncf %57 : vector<2x16x16xf32> to vector<2x16x16xbf16>
    "tpu.trace_start"() <{level = 10 : i32, message = "bqk,bkd->bqd"}> : () -> ()
    %cst_19 = arith.constant dense<0.000000e+00> : vector<2x16x32xf32>
    %59 = tpu.matmul %58, %44, %cst_19 {dimension_numbers = #tpu.dot_dimension_numbers<[2], [1], [1], [2], [0, 0, 0, 1, 1, 2], [0], [0]>} : vector<2x16x16xbf16>, vector<2x16x32xbf16>, vector<2x16x32xf32> -> vector<2x16x32xf32>
    "tpu.trace_stop"() : () -> ()
    %60 = vector.extract_strided_slice %34 {offsets = [0, 0, 32], sizes = [2, 16, 32], strides = [1, 1, 1]} : vector<2x16x128xf32> to vector<2x16x32xf32>
    %61 = arith.truncf %60 : vector<2x16x32xf32> to vector<2x16x32xbf16>
    %62 = vector.extract_strided_slice %36 {offsets = [0, 0, 32], sizes = [2, 16, 32], strides = [1, 1, 1]} : vector<2x16x128xf32> to vector<2x16x32xf32>
    %63 = arith.truncf %62 : vector<2x16x32xf32> to vector<2x16x32xbf16>
    %64 = vector.extract_strided_slice %38 {offsets = [0, 0, 32], sizes = [2, 16, 32], strides = [1, 1, 1]} : vector<2x16x128xf32> to vector<2x16x32xf32>
    %65 = arith.truncf %64 : vector<2x16x32xf32> to vector<2x16x32xbf16>
    "tpu.trace_start"() <{level = 10 : i32, message = "bqd,bkd->bqk"}> : () -> ()
    %cst_20 = arith.constant dense<0.000000e+00> : vector<2x16x16xf32>
    %66 = tpu.matmul %61, %63, %cst_20 {dimension_numbers = #tpu.dot_dimension_numbers<[2], [2], [1], [1], [0, 0, 0, 1, 1, 1], [0], [0]>} : vector<2x16x32xbf16>, vector<2x16x32xbf16>, vector<2x16x16xf32> -> vector<2x16x16xf32>
    "tpu.trace_stop"() : () -> ()
    %cst_21 = arith.constant 0.0883883461 : f32
    %67 = vector.broadcast %cst_21 : f32 to vector<2x16x16xf32>
    %68 = arith.mulf %66, %67 : vector<2x16x16xf32>
    %cst_22 = arith.constant dense<0xFF800000> : vector<2x16xf32>
    %69 = vector.multi_reduction <maximumf>, %68, %cst_22 [2] : vector<2x16x16xf32> to vector<2x16xf32>
    %70 = vector.shape_cast %69 : vector<2x16xf32> to vector<2x16x1xf32>
    %71 = vector.broadcast %70 : vector<2x16x1xf32> to vector<2x16x16xf32>
    %72 = arith.subf %68, %71 : vector<2x16x16xf32>
    %73 = math.exp %72 : vector<2x16x16xf32>
    %cst_23 = arith.constant dense<0.000000e+00> : vector<2x16xf32>
    %74 = vector.multi_reduction <add>, %73, %cst_23 [2] : vector<2x16x16xf32> to vector<2x16xf32>
    %75 = vector.shape_cast %74 : vector<2x16xf32> to vector<2x16x1xf32>
    %76 = tpu.reciprocal %75 {approx = true} : vector<2x16x1xf32> -> vector<2x16x1xf32>
    %77 = vector.broadcast %76 : vector<2x16x1xf32> to vector<2x16x16xf32>
    %78 = arith.mulf %73, %77 : vector<2x16x16xf32>
    %79 = arith.truncf %78 : vector<2x16x16xf32> to vector<2x16x16xbf16>
    "tpu.trace_start"() <{level = 10 : i32, message = "bqk,bkd->bqd"}> : () -> ()
    %cst_24 = arith.constant dense<0.000000e+00> : vector<2x16x32xf32>
    %80 = tpu.matmul %79, %65, %cst_24 {dimension_numbers = #tpu.dot_dimension_numbers<[2], [1], [1], [2], [0, 0, 0, 1, 1, 2], [0], [0]>} : vector<2x16x16xbf16>, vector<2x16x32xbf16>, vector<2x16x32xf32> -> vector<2x16x32xf32>
    "tpu.trace_stop"() : () -> ()
    %81 = vector.extract_strided_slice %34 {offsets = [0, 0, 64], sizes = [2, 16, 32], strides = [1, 1, 1]} : vector<2x16x128xf32> to vector<2x16x32xf32>
    %82 = arith.truncf %81 : vector<2x16x32xf32> to vector<2x16x32xbf16>
    %83 = vector.extract_strided_slice %36 {offsets = [0, 0, 64], sizes = [2, 16, 32], strides = [1, 1, 1]} : vector<2x16x128xf32> to vector<2x16x32xf32>
    %84 = arith.truncf %83 : vector<2x16x32xf32> to vector<2x16x32xbf16>
    %85 = vector.extract_strided_slice %38 {offsets = [0, 0, 64], sizes = [2, 16, 32], strides = [1, 1, 1]} : vector<2x16x128xf32> to vector<2x16x32xf32>
    %86 = arith.truncf %85 : vector<2x16x32xf32> to vector<2x16x32xbf16>
    "tpu.trace_start"() <{level = 10 : i32, message = "bqd,bkd->bqk"}> : () -> ()
    %cst_25 = arith.constant dense<0.000000e+00> : vector<2x16x16xf32>
    %87 = tpu.matmul %82, %84, %cst_25 {dimension_numbers = #tpu.dot_dimension_numbers<[2], [2], [1], [1], [0, 0, 0, 1, 1, 1], [0], [0]>} : vector<2x16x32xbf16>, vector<2x16x32xbf16>, vector<2x16x16xf32> -> vector<2x16x16xf32>
    "tpu.trace_stop"() : () -> ()
    %cst_26 = arith.constant 0.0883883461 : f32
    %88 = vector.broadcast %cst_26 : f32 to vector<2x16x16xf32>
    %89 = arith.mulf %87, %88 : vector<2x16x16xf32>
    %cst_27 = arith.constant dense<0xFF800000> : vector<2x16xf32>
    %90 = vector.multi_reduction <maximumf>, %89, %cst_27 [2] : vector<2x16x16xf32> to vector<2x16xf32>
    %91 = vector.shape_cast %90 : vector<2x16xf32> to vector<2x16x1xf32>
    %92 = vector.broadcast %91 : vector<2x16x1xf32> to vector<2x16x16xf32>
    %93 = arith.subf %89, %92 : vector<2x16x16xf32>
    %94 = math.exp %93 : vector<2x16x16xf32>
    %cst_28 = arith.constant dense<0.000000e+00> : vector<2x16xf32>
    %95 = vector.multi_reduction <add>, %94, %cst_28 [2] : vector<2x16x16xf32> to vector<2x16xf32>
    %96 = vector.shape_cast %95 : vector<2x16xf32> to vector<2x16x1xf32>
    %97 = tpu.reciprocal %96 {approx = true} : vector<2x16x1xf32> -> vector<2x16x1xf32>
    %98 = vector.broadcast %97 : vector<2x16x1xf32> to vector<2x16x16xf32>
    %99 = arith.mulf %94, %98 : vector<2x16x16xf32>
    %100 = arith.truncf %99 : vector<2x16x16xf32> to vector<2x16x16xbf16>
    "tpu.trace_start"() <{level = 10 : i32, message = "bqk,bkd->bqd"}> : () -> ()
    %cst_29 = arith.constant dense<0.000000e+00> : vector<2x16x32xf32>
    %101 = tpu.matmul %100, %86, %cst_29 {dimension_numbers = #tpu.dot_dimension_numbers<[2], [1], [1], [2], [0, 0, 0, 1, 1, 2], [0], [0]>} : vector<2x16x16xbf16>, vector<2x16x32xbf16>, vector<2x16x32xf32> -> vector<2x16x32xf32>
    "tpu.trace_stop"() : () -> ()
    %102 = vector.extract_strided_slice %34 {offsets = [0, 0, 96], sizes = [2, 16, 32], strides = [1, 1, 1]} : vector<2x16x128xf32> to vector<2x16x32xf32>
    %103 = arith.truncf %102 : vector<2x16x32xf32> to vector<2x16x32xbf16>
    %104 = vector.extract_strided_slice %36 {offsets = [0, 0, 96], sizes = [2, 16, 32], strides = [1, 1, 1]} : vector<2x16x128xf32> to vector<2x16x32xf32>
    %105 = arith.truncf %104 : vector<2x16x32xf32> to vector<2x16x32xbf16>
    %106 = vector.extract_strided_slice %38 {offsets = [0, 0, 96], sizes = [2, 16, 32], strides = [1, 1, 1]} : vector<2x16x128xf32> to vector<2x16x32xf32>
    %107 = arith.truncf %106 : vector<2x16x32xf32> to vector<2x16x32xbf16>
    "tpu.trace_start"() <{level = 10 : i32, message = "bqd,bkd->bqk"}> : () -> ()
    %cst_30 = arith.constant dense<0.000000e+00> : vector<2x16x16xf32>
    %108 = tpu.matmul %103, %105, %cst_30 {dimension_numbers = #tpu.dot_dimension_numbers<[2], [2], [1], [1], [0, 0, 0, 1, 1, 1], [0], [0]>} : vector<2x16x32xbf16>, vector<2x16x32xbf16>, vector<2x16x16xf32> -> vector<2x16x16xf32>
    "tpu.trace_stop"() : () -> ()
    %cst_31 = arith.constant 0.0883883461 : f32
    %109 = vector.broadcast %cst_31 : f32 to vector<2x16x16xf32>
    %110 = arith.mulf %108, %109 : vector<2x16x16xf32>
    %cst_32 = arith.constant dense<0xFF800000> : vector<2x16xf32>
    %111 = vector.multi_reduction <maximumf>, %110, %cst_32 [2] : vector<2x16x16xf32> to vector<2x16xf32>
    %112 = vector.shape_cast %111 : vector<2x16xf32> to vector<2x16x1xf32>
    %113 = vector.broadcast %112 : vector<2x16x1xf32> to vector<2x16x16xf32>
    %114 = arith.subf %110, %113 : vector<2x16x16xf32>
    %115 = math.exp %114 : vector<2x16x16xf32>
    %cst_33 = arith.constant dense<0.000000e+00> : vector<2x16xf32>
    %116 = vector.multi_reduction <add>, %115, %cst_33 [2] : vector<2x16x16xf32> to vector<2x16xf32>
    %117 = vector.shape_cast %116 : vector<2x16xf32> to vector<2x16x1xf32>
    %118 = tpu.reciprocal %117 {approx = true} : vector<2x16x1xf32> -> vector<2x16x1xf32>
    %119 = vector.broadcast %118 : vector<2x16x1xf32> to vector<2x16x16xf32>
    %120 = arith.mulf %115, %119 : vector<2x16x16xf32>
    %121 = arith.truncf %120 : vector<2x16x16xf32> to vector<2x16x16xbf16>
    "tpu.trace_start"() <{level = 10 : i32, message = "bqk,bkd->bqd"}> : () -> ()
    %cst_34 = arith.constant dense<0.000000e+00> : vector<2x16x32xf32>
    %122 = tpu.matmul %121, %107, %cst_34 {dimension_numbers = #tpu.dot_dimension_numbers<[2], [1], [1], [2], [0, 0, 0, 1, 1, 2], [0], [0]>} : vector<2x16x16xbf16>, vector<2x16x32xbf16>, vector<2x16x32xf32> -> vector<2x16x32xf32>
    "tpu.trace_stop"() : () -> ()
    %123 = tpu.concatenate %59, %80, %101, %122 in 2 : vector<2x16x32xf32>, vector<2x16x32xf32>, vector<2x16x32xf32>, vector<2x16x32xf32> -> vector<2x16x128xf32>
    %124 = vector.shape_cast %123 : vector<2x16x128xf32> to vector<32x128xf32>
    %125 = arith.truncf %124 : vector<32x128xf32> to vector<32x128xbf16>
    %c0_35 = arith.constant 0 : index
    %c0_36 = arith.constant 0 : index
    %126 = vector.load %arg6[%c0_35, %c0_36] : memref<128x128xbf16, #tpu.memory_space<vmem>>, vector<128x128xbf16>
    %cst_37 = arith.constant dense<0.000000e+00> : vector<32x128xf32>
    %127 = tpu.matmul %125, %126, %cst_37 {dimension_numbers = #tpu.dot_dimension_numbers<[1], [0], [0], [1], [0, 0, 1, 1], [], []>} : vector<32x128xbf16>, vector<128x128xbf16>, vector<32x128xf32> -> vector<32x128xf32>
    %128 = vector.broadcast %4 : vector<1x128xf32> to vector<32x128xf32>
    %129 = arith.addf %127, %128 : vector<32x128xf32>
    %130 = arith.addf %26, %129 : vector<32x128xf32>
    %131 = vector.shape_cast %130 : vector<32x128xf32> to vector<2x16x128xf32>
    %132 = vector.extract_strided_slice %131 {offsets = [0, 0, 0], sizes = [2, 1, 128], strides = [1, 1, 1]} : vector<2x16x128xf32> to vector<2x1x128xf32>
    %133 = vector.extract_strided_slice %131 {offsets = [0, 15, 0], sizes = [2, 1, 128], strides = [1, 1, 1]} : vector<2x16x128xf32> to vector<2x1x128xf32>
    %134 = tpu.concatenate %132, %132, %131, %133, %133 in 1 : vector<2x1x128xf32>, vector<2x1x128xf32>, vector<2x16x128xf32>, vector<2x1x128xf32>, vector<2x1x128xf32> -> vector<2x20x128xf32>
    %135 = vector.extract_strided_slice %134 {offsets = [0, 0, 0], sizes = [2, 16, 128], strides = [1, 1, 1]} : vector<2x20x128xf32> to vector<2x16x128xf32>
    %136 = vector.extract_strided_slice %134 {offsets = [0, 1, 0], sizes = [2, 16, 128], strides = [1, 1, 1]} : vector<2x20x128xf32> to vector<2x16x128xf32>
    %137 = arith.addf %135, %136 : vector<2x16x128xf32>
    %138 = vector.extract_strided_slice %134 {offsets = [0, 2, 0], sizes = [2, 16, 128], strides = [1, 1, 1]} : vector<2x20x128xf32> to vector<2x16x128xf32>
    %139 = arith.addf %137, %138 : vector<2x16x128xf32>
    %140 = vector.extract_strided_slice %134 {offsets = [0, 3, 0], sizes = [2, 16, 128], strides = [1, 1, 1]} : vector<2x20x128xf32> to vector<2x16x128xf32>
    %141 = arith.addf %139, %140 : vector<2x16x128xf32>
    %142 = vector.extract_strided_slice %134 {offsets = [0, 4, 0], sizes = [2, 16, 128], strides = [1, 1, 1]} : vector<2x20x128xf32> to vector<2x16x128xf32>
    %143 = arith.addf %141, %142 : vector<2x16x128xf32>
    %cst_38 = arith.constant 2.000000e-01 : f32
    %144 = vector.broadcast %cst_38 : f32 to vector<2x16x128xf32>
    %145 = arith.mulf %143, %144 : vector<2x16x128xf32>
    %146 = arith.subf %131, %145 : vector<2x16x128xf32>
    %147 = vector.shape_cast %146 : vector<2x16x128xf32> to vector<32x128xf32>
    %148 = arith.truncf %147 : vector<32x128xf32> to vector<32x128xbf16>
    %c0_39 = arith.constant 0 : index
    %c0_40 = arith.constant 0 : index
    %149 = vector.load %arg7[%c0_39, %c0_40] : memref<128x512xbf16, #tpu.memory_space<vmem>>, vector<128x512xbf16>
    %cst_41 = arith.constant dense<0.000000e+00> : vector<32x512xf32>
    %150 = tpu.matmul %148, %149, %cst_41 {dimension_numbers = #tpu.dot_dimension_numbers<[1], [0], [0], [1], [0, 0, 1, 1], [], []>} : vector<32x128xbf16>, vector<128x512xbf16>, vector<32x512xf32> -> vector<32x512xf32>
    %cst_42 = arith.constant 0.000000e+00 : f32
    %151 = vector.broadcast %cst_42 : f32 to vector<32x512xf32>
    %152 = arith.maximumf %150, %151 : vector<32x512xf32>
    %153 = arith.truncf %152 : vector<32x512xf32> to vector<32x512xbf16>
    %c0_43 = arith.constant 0 : index
    %c0_44 = arith.constant 0 : index
    %154 = vector.load %arg8[%c0_43, %c0_44] : memref<512x128xbf16, #tpu.memory_space<vmem>>, vector<512x128xbf16>
    %cst_45 = arith.constant dense<0.000000e+00> : vector<32x128xf32>
    %155 = tpu.matmul %153, %154, %cst_45 {dimension_numbers = #tpu.dot_dimension_numbers<[1], [0], [0], [1], [0, 0, 1, 1], [], []>} : vector<32x512xbf16>, vector<512x128xbf16>, vector<32x128xf32> -> vector<32x128xf32>
    %156 = arith.addf %147, %155 : vector<32x128xf32>
    %157 = vector.shape_cast %156 : vector<32x128xf32> to vector<2x16x128xf32>
    %158 = vector.extract_strided_slice %157 {offsets = [0, 0, 0], sizes = [2, 1, 128], strides = [1, 1, 1]} : vector<2x16x128xf32> to vector<2x1x128xf32>
    %159 = vector.extract_strided_slice %157 {offsets = [0, 15, 0], sizes = [2, 1, 128], strides = [1, 1, 1]} : vector<2x16x128xf32> to vector<2x1x128xf32>
    %160 = tpu.concatenate %158, %158, %157, %159, %159 in 1 : vector<2x1x128xf32>, vector<2x1x128xf32>, vector<2x16x128xf32>, vector<2x1x128xf32>, vector<2x1x128xf32> -> vector<2x20x128xf32>
    %161 = vector.extract_strided_slice %160 {offsets = [0, 0, 0], sizes = [2, 16, 128], strides = [1, 1, 1]} : vector<2x20x128xf32> to vector<2x16x128xf32>
    %162 = vector.extract_strided_slice %160 {offsets = [0, 1, 0], sizes = [2, 16, 128], strides = [1, 1, 1]} : vector<2x20x128xf32> to vector<2x16x128xf32>
    %163 = arith.addf %161, %162 : vector<2x16x128xf32>
    %164 = vector.extract_strided_slice %160 {offsets = [0, 2, 0], sizes = [2, 16, 128], strides = [1, 1, 1]} : vector<2x20x128xf32> to vector<2x16x128xf32>
    %165 = arith.addf %163, %164 : vector<2x16x128xf32>
    %166 = vector.extract_strided_slice %160 {offsets = [0, 3, 0], sizes = [2, 16, 128], strides = [1, 1, 1]} : vector<2x20x128xf32> to vector<2x16x128xf32>
    %167 = arith.addf %165, %166 : vector<2x16x128xf32>
    %168 = vector.extract_strided_slice %160 {offsets = [0, 4, 0], sizes = [2, 16, 128], strides = [1, 1, 1]} : vector<2x20x128xf32> to vector<2x16x128xf32>
    %169 = arith.addf %167, %168 : vector<2x16x128xf32>
    %cst_46 = arith.constant 2.000000e-01 : f32
    %170 = vector.broadcast %cst_46 : f32 to vector<2x16x128xf32>
    %171 = arith.mulf %169, %170 : vector<2x16x128xf32>
    %172 = arith.subf %157, %171 : vector<2x16x128xf32>
    %c0_47 = arith.constant 0 : index
    %c0_48 = arith.constant 0 : index
    %c0_49 = arith.constant 0 : index
    %173 = vector.load %arg10[%c0_47, %c0_48, %c0_49] : memref<2x16x128xf32, #tpu.memory_space<vmem>>, vector<2x16x128xf32>
    tpu.vector_store %arg10[%c0_47, %c0_48, %c0_49], %172 {strides = array<i32>} : memref<2x16x128xf32, #tpu.memory_space<vmem>>, vector<2x16x128xf32>,
    %c0_50 = arith.constant 0 : index
    %c0_51 = arith.constant 0 : index
    %c0_52 = arith.constant 0 : index
    %174 = vector.load %arg2[%c0_50, %c0_51, %c0_52] : memref<2x16x128xf32, #tpu.memory_space<vmem>>, vector<2x16x128xf32>
    %175 = vector.extract_strided_slice %174 {offsets = [0, 15, 0], sizes = [2, 1, 128], strides = [1, 1, 1]} : vector<2x16x128xf32> to vector<2x1x128xf32>
    %176 = vector.extract_strided_slice %174 {offsets = [0, 0, 0], sizes = [2, 15, 128], strides = [1, 1, 1]} : vector<2x16x128xf32> to vector<2x15x128xf32>
    %177 = tpu.concatenate %175, %176 in 1 : vector<2x1x128xf32>, vector<2x15x128xf32> -> vector<2x16x128xf32>
    %178 = vector.extract_strided_slice %174 {offsets = [0, 1, 0], sizes = [2, 15, 128], strides = [1, 1, 1]} : vector<2x16x128xf32> to vector<2x15x128xf32>
    %179 = vector.extract_strided_slice %174 {offsets = [0, 0, 0], sizes = [2, 1, 128], strides = [1, 1, 1]} : vector<2x16x128xf32> to vector<2x1x128xf32>
    %180 = tpu.concatenate %178, %179 in 1 : vector<2x15x128xf32>, vector<2x1x128xf32> -> vector<2x16x128xf32>
    %181 = tpu.concatenate %177, %174, %180 in 2 : vector<2x16x128xf32>, vector<2x16x128xf32>, vector<2x16x128xf32> -> vector<2x16x384xf32>
    %182 = vector.shape_cast %181 : vector<2x16x384xf32> to vector<32x384xf32>
    %183 = arith.truncf %182 : vector<32x384xf32> to vector<32x384xbf16>
    %c0_53 = arith.constant 0 : index
    %c0_54 = arith.constant 0 : index
    %184 = vector.load %arg9[%c0_53, %c0_54] : memref<384x128xbf16, #tpu.memory_space<vmem>>, vector<384x128xbf16>
    %cst_55 = arith.constant dense<0.000000e+00> : vector<32x128xf32>
    %185 = tpu.matmul %183, %184, %cst_55 {dimension_numbers = #tpu.dot_dimension_numbers<[1], [0], [0], [1], [0, 0, 1, 1], [], []>} : vector<32x384xbf16>, vector<384x128xbf16>, vector<32x128xf32> -> vector<32x128xf32>
    %186 = vector.shape_cast %185 : vector<32x128xf32> to vector<2x16x128xf32>
    %c0_56 = arith.constant 0 : index
    %c0_57 = arith.constant 0 : index
    %c0_58 = arith.constant 0 : index
    %187 = vector.load %arg11[%c0_56, %c0_57, %c0_58] : memref<2x16x128xf32, #tpu.memory_space<vmem>>, vector<2x16x128xf32>
    tpu.vector_store %arg11[%c0_56, %c0_57, %c0_58], %186 {strides = array<i32>} : memref<2x16x128xf32, #tpu.memory_space<vmem>>, vector<2x16x128xf32>,
    return
  }
  func.func @transform_0(%arg0: i32) -> (i32, i32, i32) {
    %c0_i32 = arith.constant 0 : i32
    %c0_i32_0 = arith.constant 0 : i32
    %c0_i32_1 = arith.constant 0 : i32
    return %arg0, %c0_i32, %c0_i32_0 : i32, i32, i32
  }
  func.func @transform_1(%arg0: i32) -> (i32, i32, i32) {
    %c0_i32 = arith.constant 0 : i32
    %c0_i32_0 = arith.constant 0 : i32
    %c0_i32_1 = arith.constant 0 : i32
    return %arg0, %c0_i32, %c0_i32_0 : i32, i32, i32
  }
  func.func @transform_2(%arg0: i32) -> (i32, i32) {
    %c0_i32 = arith.constant 0 : i32
    %c0_i32_0 = arith.constant 0 : i32
    %c0_i32_1 = arith.constant 0 : i32
    return %c0_i32, %c0_i32_0 : i32, i32
  }
  func.func @transform_3(%arg0: i32) -> (i32, i32) {
    %c0_i32 = arith.constant 0 : i32
    %c0_i32_0 = arith.constant 0 : i32
    %c0_i32_1 = arith.constant 0 : i32
    return %c0_i32, %c0_i32_0 : i32, i32
  }
  func.func @transform_4(%arg0: i32) -> (i32, i32) {
    %c0_i32 = arith.constant 0 : i32
    %c0_i32_0 = arith.constant 0 : i32
    %c0_i32_1 = arith.constant 0 : i32
    return %c0_i32, %c0_i32_0 : i32, i32
  }
  func.func @transform_5(%arg0: i32) -> (i32, i32) {
    %c0_i32 = arith.constant 0 : i32
    %c0_i32_0 = arith.constant 0 : i32
    %c0_i32_1 = arith.constant 0 : i32
    return %c0_i32, %c0_i32_0 : i32, i32
  }
  func.func @transform_6(%arg0: i32) -> (i32, i32) {
    %c0_i32 = arith.constant 0 : i32
    %c0_i32_0 = arith.constant 0 : i32
    %c0_i32_1 = arith.constant 0 : i32
    return %c0_i32, %c0_i32_0 : i32, i32
  }
  func.func @transform_7(%arg0: i32) -> (i32, i32) {
    %c0_i32 = arith.constant 0 : i32
    %c0_i32_0 = arith.constant 0 : i32
    %c0_i32_1 = arith.constant 0 : i32
    return %c0_i32, %c0_i32_0 : i32, i32
  }
  func.func @transform_8(%arg0: i32) -> (i32, i32) {
    %c0_i32 = arith.constant 0 : i32
    %c0_i32_0 = arith.constant 0 : i32
    %c0_i32_1 = arith.constant 0 : i32
    return %c0_i32, %c0_i32_0 : i32, i32
  }
  func.func @transform_9(%arg0: i32) -> (i32, i32, i32) {
    %c0_i32 = arith.constant 0 : i32
    %c0_i32_0 = arith.constant 0 : i32
    %c0_i32_1 = arith.constant 0 : i32
    return %arg0, %c0_i32, %c0_i32_0 : i32, i32, i32
  }
  func.func @transform_10(%arg0: i32) -> (i32, i32, i32) {
    %c0_i32 = arith.constant 0 : i32
    %c0_i32_0 = arith.constant 0 : i32
    %c0_i32_1 = arith.constant 0 : i32
    return %arg0, %c0_i32, %c0_i32_0 : i32, i32, i32
  }
}

</mosaic_0001>

<bundles_post_ra>
// kernel: tpu_custom_call.1
= control target key start
LH: loop header
LB: loop body
LE: loop exit
PB: predicated region body
PF: predicated region fallthrough
CT: control target
= control target key end

     0   :  { %s5603_s0 = inlined_call_operand.hbm [shape: f32[4,16,128], index: 0, kind: input, shape index: {}]   ;;  %s5604_s1 = inlined_call_operand.hbm [shape: f32[4,16,128], index: 1, kind: input, shape index: {}]   ;;  %s5605_s2 = inlined_call_operand.vmem [shape: f32[3,128], index: 2, kind: input, shape index: {}]   ;;  %s5606_s3 = inlined_call_operand.hbm [shape: bf16[128,384], index: 3, kind: input, shape index: {}]   ;;  %s5607_s4 = inlined_call_operand.vmem [shape: f32[1,384], index: 4, kind: input, shape index: {}]   ;;  %s5608_s5 = inlined_call_operand.hbm [shape: bf16[128,128], index: 5, kind: input, shape index: {}]   ;;  %s5609_s6 = inlined_call_operand.hbm [shape: bf16[128,512], index: 6, kind: input, shape index: {}]   ;;  %s5610_s7 = inlined_call_operand.hbm [shape: bf16[512,128], index: 7, kind: input, shape index: {}]   ;;  %s5611_s8 = inlined_call_operand.hbm [shape: bf16[384,128], index: 8, kind: input, shape index: {}]   ;;  %s5612_s9 = inlined_call_operand.hbm [shape: f32[4,16,128], index: 9, kind: output, shape index: {0}]   ;;  %s5613_s10 = inlined_call_operand.hbm [shape: f32[4,16,128], index: 10, kind: output, shape index: {1}]  }
   0x1   :  { %5622 = sst [smem:[#allocation24_spill]] %s5603_s0 }
   0x2   :  { %5623 = sst [smem:[#allocation25_spill]] %s5604_s1 }
   0x3   :  { %5624 = sst [smem:[#allocation26_spill]] %s5606_s3 }
   0x4   :  { %5625 = sst [smem:[#allocation27_spill]] %s5608_s5 }
   0x5   :  { %5626 = sst [smem:[#allocation28_spill]] %s5609_s6 }
   0x6   :  { %5627 = sst [smem:[#allocation29_spill]] %s5610_s7 }
   0x7   :  { %5628 = sst [smem:[#allocation30_spill]] %s5612_s9 }
   0x8   :  { %5629 = sst [smem:[#allocation31_spill]] %s5613_s10 }
   0x9   :  { %16 = vsyncpa [#allocation3], 0 }
   0xa   :  { %18 = vsyncpa [#allocation3 + $0x1], 0 }
   0xb   :  { %19 = vsyncpa [#allocation6], 0 }
   0xc   :  { %21 = vsyncpa [#allocation6 + $0x1], 0 }
   0xd   :  { %22 = vsyncpa [#allocation9], 0 }
   0xe   :  { %23 = vsyncpa [#allocation12], 0 }
   0xf   :  { %24 = vsyncpa [#allocation4], 0 }
  0x10   :  { %26 = vsyncpa [#allocation4 + $0x1], 0 }
  0x11   :  { %27 = vsyncpa [#allocation16], 0 }
  0x12   :  { %29 = vsyncpa [#allocation16 + $0x1], 0  ;;  %s4765_s13 = smov 0   ;;  %s4767_s14 = smov 0  }
  0x13   :  { %s4769_s15 = smov 0   ;;  %s4771_s16 = smov 0  }
  0x14 LB: > { %s4685_s17 = smov [#allocation7]   ;;  %s4786_s19 = sadd.s32 4294967295, %s4683_s16   ;;  %s4683_s16 = sphi %s4771_s16, %s5662_s16   ;;  %s4679_s15 = sphi %s4769_s15, %s5661_s15   ;;  %s4675_s14 = sphi %s4767_s14, %s5660_s14   ;;  %s4671_s13 = sphi %s4765_s13, %s5659_s13  }
  0x15   : > { %s306_s18 = sshll.u32 %s4685_s17, 4  ;;  %p3516_p0 = scmp.ge.s32.totalorder %s4683_s16, 1  ;;  %s4791_s18 = int_to_ptr.vmem [resolvable:$true] %s306_s18 }
  0x16   : > { %p5616_p1 = scmp.eq.s32.totalorder %s4786_s19, 0  ;;  %p291_p2 = scmp.lt.s32.totalorder %s4683_s16, 3 }
  0x17   : > { %s4686_s21 = smov [#allocation8]   ;;  %s4687_s24 = smov [#allocation11]  }
  0x18   : > { %p4793_p3 = pnand %p3516_p0, %p291_p2  ;;  %s322_s22 = sshll.u32 %s4686_s21, 4  ;;  %s4806_s22 = int_to_ptr.vmem [resolvable:$true] %s322_s22 }
  0x19   : > { %s4808_s25 = sshll.u32 %s4687_s24, 4  ;;  %s5632_s3 = sld [smem:[#allocation26_spill]]  ;;  %s349_s25 = int_to_ptr.vmem [resolvable:$true] %s4808_s25 }
  0x1a   : > { %s5630_s20 = scalar_select %p4793_p3, 1, 0 }
  0x1b   : > { %p4028_p5 = pneg %p4793_p3 }
  0x1d   : > { %p4802_p6 = pnand %p4028_p5, %p5616_p1 }
  0x1f   : > { %s4369_s28 = scalar_lea.hbm %s5632_s3, 3072  ;;  %p4818_p8 = pneg %p4802_p6 }
  0x20   : > { %p4370_p7 = scmp.ne.s32.totalorder %s5632_s3, %s4369_s28  ;;  %p4376_p11 = scmp.lt.u32.totalorder %s4369_s28, %s5632_s3 }
  0x22   : > { %p4372_p9 = pnand %p4818_p8, %p4370_p7 }
  0x24   : > { %p4373_p10 = pneg %p4372_p9 }
  0x26   : > { %p4378_p12 = pnand %p4376_p11, %p4373_p10 }
  0x28   : > { %4381 = shalt.err (!%p4378_p12)
}
  0x29   : > { %s4382_s21 = scalar_lea.vmem %s4791_s18, 3072  ;;  %p4390_p5 = scmp.lt.s32.totalorder %s4791_s18, %s4791_s18 }
  0x2a   : > { %p4383_p13 = scmp.ne.s32.totalorder %s4791_s18, %s4382_s21  ;;  %p4391_p4 = scmp.lt.s32.totalorder %s4382_s21, %s4382_s21 }
  0x2c   : > { %p4385_p0 = pnand %p4383_p13, %p4818_p8  ;;  %p4392_p7 = por %p4391_p4, %p4390_p5 }
  0x2e   : > { %p4386_p2 = pneg %p4385_p0 }
  0x30   : > { %p4393_p9 = pnand %p4392_p7, %p4386_p2 }
  0x32   : > { %4396 = shalt.err (!%p4393_p9)
}
  0x33   : > { %s4688_s24 = smov 192   ;;  %s4689_s26 = smov 12  }
  0x34   : > { %4031 = dma.hbm_to_vmem [thread:$0]  (!%p4802_p6), %s5632_s3, 3072, %s4791_s18, [#allocation6], %s4688_s24, %s4688_s24, %s4689_s26  }
  0x35   : > { %s5634_s5 = sld [smem:[#allocation27_spill]] }
  0x3b   : > { %s4397_s12 = scalar_lea.hbm %s5634_s5, 1024 }
  0x3c   : > { %p4398_p4 = scmp.ne.s32.totalorder %s5634_s5, %s4397_s12  ;;  %p4404_p12 = scmp.lt.u32.totalorder %s4397_s12, %s5634_s5 }
  0x3e   : > { %p4400_p10 = pnand %p4398_p4, %p4818_p8 }
  0x40   : > { %p4401_p11 = pneg %p4400_p10 }
  0x42   : > { %p4406_p13 = pnand %p4404_p12, %p4401_p11 }
  0x44   : > { %4409 = shalt.err (!%p4406_p13)
}
  0x45   : > { %s4410_s18 = scalar_lea.vmem %s4806_s22, 1024  ;;  %p4418_p7 = scmp.lt.s32.totalorder %s4806_s22, %s4806_s22 }
  0x46   : > { %p4411_p0 = scmp.ne.s32.totalorder %s4806_s22, %s4410_s18  ;;  %p4419_p9 = scmp.lt.s32.totalorder %s4410_s18, %s4410_s18 }
  0x48   : > { %p4413_p2 = pnand %p4411_p0, %p4818_p8  ;;  %p4420_p4 = por %p4419_p9, %p4418_p7 }
  0x4a   : > { %p4414_p5 = pneg %p4413_p2 }
  0x4c   : > { %p4421_p10 = pnand %p4420_p4, %p4414_p5 }
  0x4e   : > { %4424 = shalt.err (!%p4421_p10)
}
  0x4f   : > { %s5618_s10 = smov 64   ;;  %s5619_s9 = smov 4  }
  0x50   : > { %4034 = dma.hbm_to_vmem [thread:$0]  (!%p4802_p6), %s5634_s5, 1024, %s4806_s22, [#allocation9], %s5618_s10, %s5618_s10, %s5619_s9  }
  0x51   : > { %s5635_s7 = sld [smem:[#allocation29_spill]] }
  0x57   : > { %s4425_s29 = scalar_lea.hbm %s5635_s7, 4096 }
  0x58   : > { %p4426_p11 = scmp.ne.s32.totalorder %s5635_s7, %s4425_s29  ;;  %p4432_p0 = scmp.lt.u32.totalorder %s4425_s29, %s5635_s7 }
  0x5a   : > { %p4428_p12 = pnand %p4426_p11, %p4818_p8 }
  0x5c   : > { %p4429_p13 = pneg %p4428_p12 }
  0x5e   : > { %p4434_p2 = pnand %p4432_p0, %p4429_p13 }
  0x60   : > { %4437 = shalt.err (!%p4434_p2)
}
  0x61   : > { %s4438_s18 = scalar_lea.vmem %s349_s25, 4096  ;;  %p4446_p4 = scmp.lt.s32.totalorder %s349_s25, %s349_s25 }
  0x62   : > { %p4439_p5 = scmp.ne.s32.totalorder %s349_s25, %s4438_s18  ;;  %p4447_p10 = scmp.lt.s32.totalorder %s4438_s18, %s4438_s18 }
  0x64   : > { %p4441_p7 = pnand %p4439_p5, %p4818_p8  ;;  %p4448_p1 = por %p4447_p10, %p4446_p4 }
  0x66   : > { %p4442_p9 = pneg %p4441_p7 }
  0x68   : > { %p4449_p3 = pnand %p4448_p1, %p4442_p9 }
  0x6a   : > { %4452 = shalt.err (!%p4449_p3)
}
  0x6b   : > { %4040 = dma.hbm_to_vmem [thread:$0]  (!%p4802_p6), %s5635_s7, 4096, %s349_s25, [#allocation12], %s5618_s10, %s5618_s10, %s5619_s9  }
  0x6c   : > { %s4692_s26 = smov [#allocation10]   ;;  %s5636_s6 = sld [smem:[#allocation28_spill]] }
  0x6d   : > { %s335_s27 = sshll.u32 %s4692_s26, 4  ;;  %s336_s27 = int_to_ptr.vmem [resolvable:$true] %s335_s27 }
  0x72   : > { %s4453_s30 = scalar_lea.hbm %s5636_s6, 4096 }
  0x73   : > { %p4454_p1 = scmp.ne.s32.totalorder %s5636_s6, %s4453_s30  ;;  %p4460_p12 = scmp.lt.u32.totalorder %s4453_s30, %s5636_s6 }
  0x75   : > { %p4456_p3 = pnand %p4454_p1, %p4818_p8 }
  0x77   : > { %p4457_p11 = pneg %p4456_p3 }
  0x79   : > { %p4462_p13 = pnand %p4460_p12, %p4457_p11 }
  0x7b   : > { %4465 = shalt.err (!%p4462_p13)
}
  0x7c   : > { %s4466_s25 = scalar_lea.vmem %s336_s27, 4096  ;;  %p4474_p7 = scmp.lt.s32.totalorder %s336_s27, %s336_s27 }
  0x7d   : > { %p4467_p0 = scmp.ne.s32.totalorder %s336_s27, %s4466_s25  ;;  %p4475_p9 = scmp.lt.s32.totalorder %s4466_s25, %s4466_s25 }
  0x7f   : > { %p4469_p2 = pnand %p4467_p0, %p4818_p8  ;;  %p4476_p4 = por %p4475_p9, %p4474_p7 }
  0x81   : > { %p4470_p5 = pneg %p4469_p2 }
  0x83   : > { %p4477_p10 = pnand %p4476_p4, %p4470_p5 }
  0x85   : > { %4480 = shalt.err (!%p4477_p10)
}
  0x86   : > { %s4693_s22 = smov 256   ;;  %s4694_s24 = smov 16  }
  0x87   : > { %4037 = dma.hbm_to_vmem [thread:$0]  (!%p4802_p6), %s5636_s6, 4096, %s336_s27, [#allocation9], %s4693_s22, %s4693_s22, %s4694_s24  }
  0x88   : > { %s4695_s29 = smov [#allocation13]   ;;  %s4481_s21 = scalar_lea.hbm %s5611_s8, 3072 }
  0x89   : > { %s361_s30 = sshll.u32 %s4695_s29, 4  ;;  %p4482_p1 = scmp.ne.s32.totalorder %s5611_s8, %s4481_s21  ;;  %s362_s30 = int_to_ptr.vmem [resolvable:$true] %s361_s30 }
  0x8a   : > { %p4488_p12 = scmp.lt.u32.totalorder %s4481_s21, %s5611_s8 }
  0x8b   : > { %p4484_p3 = pnand %p4482_p1, %p4818_p8 }
  0x8d   : > { %p4485_p11 = pneg %p4484_p3 }
  0x8f   : > { %p4490_p13 = pnand %p4488_p12, %p4485_p11 }
  0x91   : > { %4493 = shalt.err (!%p4490_p13)
}
  0x92   : > { %s4494_s27 = scalar_lea.vmem %s362_s30, 3072  ;;  %p4502_p7 = scmp.lt.s32.totalorder %s362_s30, %s362_s30 }
  0x93   : > { %p4495_p0 = scmp.ne.s32.totalorder %s362_s30, %s4494_s27  ;;  %p4503_p9 = scmp.lt.s32.totalorder %s4494_s27, %s4494_s27 }
  0x95   : > { %p4497_p2 = pnand %p4495_p0, %p4818_p8  ;;  %p4504_p4 = por %p4503_p9, %p4502_p7 }
  0x97   : > { %p4498_p5 = pneg %p4497_p2 }
  0x99   : > { %p4505_p10 = pnand %p4504_p4, %p4498_p5 }
  0x9b   : > { %4508 = shalt.err (!%p4505_p10)
}
  0x9c   : > { %s5637_s22 = smov 4   ;;  %s5638_s24 = smov 64  }
  0x9d   : > { %4043 = dma.hbm_to_vmem [thread:$0]  (!%p4802_p6), %s5611_s8, 3072, %s362_s30, [#allocation12], %s5638_s24, %s5638_s24, %s5637_s22  }
  0x9e   : > { %s3515_s23 = sadd.s32 4294967294, %s4683_s16   ;;  %s4928_s11 = sadd.s32 1, %s4683_s16  }
  0x9f   : > { %s42_s26 = sadd.s32 1, %s4679_s15  ;;  %s39_s28 = ssub.s32 %s4683_s16, %s4928_s11 }
  0xa0   : > { %p49_p8 = scmp.ne.s32.totalorder %s4679_s15, %s4675_s14  ;;  %p40_p1 = scmp.eq.s32.totalorder %s39_s28, 0 }
  0xa1   : > { %p50_p3 = scmp.eq.s32.totalorder %s4683_s16, 0  ;;  %p55_p11 = scmp.ne.s32.totalorder %s4675_s14, %s4671_s13 }
  0xa2   : > { %p252_p12 = scmp.eq.s32.totalorder %s4786_s19, 1  ;;  %p5639_p0 = scmp.eq.s32.totalorder %s4786_s19, 0 }
  0xa3   : > { %s4940_s29 = scalar_select %p40_p1, %s4679_s15, %s42_s26  }
  0xa4   : > { %p51_p13 = por %p50_p3, %p49_p8  ;;  %p4944_p2 = por %p5639_p0, %p55_p11 }
  0xa5   : > { %p4948_p6 = por %p252_p12, %p49_p8  ;;  %p258_p5 = scmp.eq.s32.totalorder %s3515_s23, 1 }
  0xa6   : > { %p4063_p7 = scmp.lt.s32.totalorder %s4683_s16, 2  ;;  %s375_s17 = sand.u32 1, %s4679_s15  }
  0xa7   : > { %s5641_s12 = scalar_select %p4948_p6, 1, 0 }
  0xa8   : > { %p4954_p9 = por %p258_p5, %p55_p11  ;;  %s4958_s18 = sshll.u32 %s375_s17, 5 }
  0xa9   : > { %s5620_s25 = sshll.u32 %s4683_s16, 9  ;;  %s5643_s0 = sld [smem:[#allocation24_spill]] }
  0xaa   : > { %s5642_s21 = scalar_select %p4954_p9, 1, 0 }
  0xab   : > { %s379_s10 = scalar_lea.vmem [#allocation2], %s4958_s18  ;;  %p4969_p4 = pnand %p4063_p7, %p51_p13 }
  0xac   : > { %s387_s9 = sshll.u32 %s379_s10, 4  ;;  %s4975_s26 = scalar_lea.sflag [#allocation3], %s375_s17  ;;  %s4973_s9 = int_to_ptr.vmem [resolvable:$true] %s387_s9 }
  0xad   : > { %p4511_p8 = pneg %p4969_p4 }
  0xaf   : > { %s4966_s24 = scalar_lea.hbm %s5643_s0, %s5620_s25  ;;  %s4514_s10 = scalar_lea.hbm %s5643_s0, 1024 }
  0xb0   : > { %s4509_s28 = scalar_lea.hbm %s4966_s24, 512  ;;  %p4515_p11 = scmp.lt.u32.totalorder %s4966_s24, %s5643_s0 }
  0xb1   : > { %p4510_p10 = scmp.ne.s32.totalorder %s4966_s24, %s4509_s28  ;;  %p4516_p12 = scmp.lt.u32.totalorder %s4514_s10, %s4509_s28 }
  0xb2   : > { %p4518_p0 = scmp.lt.u32.totalorder %s4509_s28, %s4966_s24 }
  0xb3   : > { %p4512_p1 = pnand %p4511_p8, %p4510_p10  ;;  %p4517_p13 = por %p4516_p12, %p4515_p11 }
  0xb5   : > { %p4513_p3 = pneg %p4512_p1  ;;  %p4519_p5 = por %p4518_p0, %p4517_p13 }
  0xb7   : > { %p4520_p7 = pnand %p4519_p5, %p4513_p3 }
  0xb9   : > { %4523 = shalt.err (!%p4520_p7)
}
  0xba   : > { %s4524_s17 = scalar_lea.vmem %s4973_s9, 512  ;;  %s4696_s27 = smov [#allocation2]  }
  0xbb   : > { %p4525_p10 = scmp.ne.s32.totalorder %s4973_s9, %s4524_s17  ;;  %s4529_s22 = sshll.u32 %s4696_s27, 4  ;;  %s4530_s22 = int_to_ptr.vmem [resolvable:$false] %s4529_s22 }
  0xbc   : > { %s4531_s3 = scalar_lea.vmem %s4530_s22, 1024  ;;  %p4532_p6 = scmp.lt.s32.totalorder %s4973_s9, %s4530_s22 }
  0xbd   : > { %p4527_p1 = pnand %p4525_p10, %p4511_p8  ;;  %p4533_p11 = scmp.lt.s32.totalorder %s4531_s3, %s4524_s17 }
  0xbf   : > { %p4528_p9 = pneg %p4527_p1  ;;  %p4534_p12 = por %p4533_p11, %p4532_p6 }
  0xc1   : > { %p4535_p13 = pnand %p4534_p12, %p4528_p9 }
  0xc3   : > { %4538 = shalt.err (!%p4535_p13)
}
  0xc4   : > { %s4697_s25 = smov 128   ;;  %s4698_s28 = smov 8  }
  0xc5   : > { %4047 = dma.hbm_to_vmem [thread:$0]  (!%p4969_p4), %s4966_s24, 512, %s4973_s9, %s4975_s26, %s4697_s25, %s4697_s25, %s4698_s28  }
  0xc6   : > { %s5645_s10 = sshll.u32 %s4683_s16, 9  ;;  %s5646_s1 = sld [smem:[#allocation25_spill]] }
  0xc7   : > { %s401_s3 = scalar_lea.vmem [#allocation5], %s4958_s18  ;;  %s397_s5 = sand.u32 1, %s4683_s16  }
  0xc8   : > { %s409_s0 = sshll.u32 %s401_s3, 4  ;;  %s5017_s6 = scalar_lea.sflag [#allocation6], %s397_s5  ;;  %s5015_s0 = int_to_ptr.vmem [resolvable:$true] %s409_s0 }
  0xcc   : > { %s5011_s22 = scalar_lea.hbm %s5646_s1, %s5645_s10  ;;  %s4544_s26 = scalar_lea.hbm %s5646_s1, 1024 }
  0xcd   : > { %s4539_s7 = scalar_lea.hbm %s5011_s22, 512  ;;  %p4545_p0 = scmp.lt.u32.totalorder %s5011_s22, %s5646_s1 }
  0xce   : > { %p4540_p6 = scmp.ne.s32.totalorder %s5011_s22, %s4539_s7  ;;  %p4546_p5 = scmp.lt.u32.totalorder %s4544_s26, %s4539_s7 }
  0xcf   : > { %p4548_p10 = scmp.lt.u32.totalorder %s4539_s7, %s5011_s22 }
  0xd0   : > { %p4542_p9 = pnand %p4540_p6, %p4511_p8  ;;  %p4547_p7 = por %p4546_p5, %p4545_p0 }
  0xd2   : > { %p4543_p3 = pneg %p4542_p9  ;;  %p4549_p1 = por %p4548_p10, %p4547_p7 }
  0xd4   : > { %p4550_p11 = pnand %p4549_p1, %p4543_p3 }
  0xd6   : > { %4553 = shalt.err (!%p4550_p11)
}
  0xd7   : > { %s4554_s5 = scalar_lea.vmem %s5015_s0, 512  ;;  %s4699_s18 = smov [#allocation5]  }
  0xd8   : > { %p4555_p12 = scmp.ne.s32.totalorder %s5015_s0, %s4554_s5  ;;  %s4559_s27 = sshll.u32 %s4699_s18, 4  ;;  %s4560_s27 = int_to_ptr.vmem [resolvable:$false] %s4559_s27 }
  0xd9   : > { %s4561_s3 = scalar_lea.vmem %s4560_s27, 1024  ;;  %p4562_p9 = scmp.lt.s32.totalorder %s5015_s0, %s4560_s27 }
  0xda   : > { %p4557_p13 = pnand %p4555_p12, %p4511_p8  ;;  %p4563_p0 = scmp.lt.s32.totalorder %s4561_s3, %s4554_s5 }
  0xdc   : > { %p4558_p6 = pneg %p4557_p13  ;;  %p4564_p5 = por %p4563_p0, %p4562_p9 }
  0xde   : > { %p4565_p7 = pnand %p4564_p5, %p4558_p6 }
  0xe0   : > { %4568 = shalt.err (!%p4565_p7)
}
  0xe1   : > { %4050 = dma.hbm_to_vmem [thread:$0]  (!%p4969_p4), %s5011_s22, 512, %s5015_s0, %s5017_s6, %s4697_s25, %s4697_s25, %s4698_s28  }
  0xe2   : > { %p5647_p8 = scmp.ne.s32.totalorder %s5630_s20, 0 }
  0xe3   : > { %s5049_s7 = sand.u32 (!%p5647_p8), 1, %s4675_s14  }
  0xe4   : > { %421 = sbr.rel (%p5647_p8) target bundleno = 4001 (0xfa1), region = 56  ;;  %s5052_s24 = sshll.u32 (!%p5647_p8), %s5049_s7, 5 }
  0xe5   : > { %s424_s23 = scalar_lea.sflag (!%p5647_p8), [#allocation3], %s5049_s7  ;;  %s427_s9 = scalar_lea.vmem (!%p5647_p8), [#allocation2], %s5052_s24 }
  0xeb   : > { %4642 = dma.done.wait (%p4944_p2), %s424_s23, 512  }
  0xec   : > { %4644 = vsyncadd (%p4944_p2), %s424_s23, 4294966784  ;;  %s432_s0 = sand.u32 1, %s4786_s19   ;;  %s5062_s20 = scalar_lea.vmem [#allocation5], %s5052_s24 }
  0xed   : > { %s433_s6 = scalar_lea.sflag [#allocation6], %s432_s0 }
  0xee   : > { %4646 = dma.done.wait (%p4944_p2), %s433_s6, 512  }
  0xef   : > { %4648 = vsyncadd (%p4944_p2), %s433_s6, 4294966784  ;;  %p5648_p4 = scmp.eq.s32.totalorder %s4786_s19, 0 }
  0xf1   : > { %4650 = dma.done.wait (%p5648_p4), [#allocation6], 3072   ;;  %p5649_p3 = pmov %p5648_p4 }
  0xf3   : > { %4652 = vsyncadd (%p5649_p3), [#allocation6], 4294964224  ;;  %p5650_p10 = pmov %p5649_p3 }
  0xf4   : > { %p5651_p1 = pmov %p5649_p3 }
  0xf5   : > { %4654 = dma.done.wait (%p5650_p10), [#allocation9], 5120  }
  0xf6   : > { %4656 = vsyncadd (%p5651_p1), [#allocation9], 4294962176  ;;  %p5652_p11 = pmov %p5651_p1 }
  0xf7   : > { %p5653_p12 = pmov %p5651_p1 }
  0xf8   : > { %4658 = dma.done.wait (%p5652_p11), [#allocation12], 7168  }
  0xf9   : > { %4660 = vsyncadd (%p5653_p12), [#allocation12], 4294960128  ;;  %v5080_v0 = vld [vmem:[%s427_s9] sm:$0xff]  ;;  %v5082_v1 = vld [vmem:[%s427_s9 + $0x8] sm:$0xff]  ;;  %v4700_v24 = vmov 0   ;;  %vm4702_vm0 = vmmov 0  }
  0xfa   : > { %515 = vadd.xlane.f32.xlu0 %v5080_v0  ;;  %v528_v2 = vmul.f32 %v5080_v0, %v5080_v0  ;;  %v4153_v3 = vld [vmem:[#allocation7 + $0x4] ss:$12 sps:$4 sm:$0xff]   ;;  %v529_v4 = vmul.f32 %v5082_v1, %v5082_v1  ;;  %v5092_v6 = vld [vmem:[%s427_s9 + $0x18] sm:$0xff]  ;;  %v4155_v9 = vld [vmem:[#allocation7] ss:$12 sps:$4 sm:$0xff]   ;;  %795 = vmatprep.mubr.bf16.mxu0 %v4700_v24  ;;  %vm871_vm1 = vcmask 261120  }
  0xfb   : > { %v5089_v5 = vld [vmem:[%s427_s9 + $0x10] sm:$0xff]  ;;  %763 = vmatprep.subr.bf16.mxu0 %v4153_v3  ;;  %v531_v8 = vmul.f32 %v5092_v6, %v5092_v6  ;;  %v4156_v10 = vld [vmem:[#allocation7 + $0x1c] ss:$12 sps:$4 sm:$0xff]   ;;  %v4158_v11 = vld [vmem:[#allocation7 + $0x18] ss:$12 sps:$4 sm:$0xff]   ;;  %vm970_vm2 = vcmask 130048  }
  0xfc   : > { %532 = vadd.xlane.f32.xlu1 %v528_v2  ;;  %v530_v7 = vmul.f32 %v5089_v5, %v5089_v5  ;;  %764 = vmatpush1.bf16.msra.mxu0 %v4155_v9  ;;  %v4159_v12 = vld [vmem:[#allocation7 + $0x34] ss:$12 sps:$4 sm:$0xff]   ;;  %v4161_v13 = vld [vmem:[#allocation7 + $0x30] ss:$12 sps:$4 sm:$0xff]   ;;  %v4162_v14 = vld [vmem:[#allocation7 + $0x4c] ss:$12 sps:$4 sm:$0xff]  }
  0xfd   : > { %765 = vmatprep.subr.bf16.mxu0 %v4156_v10  ;;  %v4164_v15 = vld [vmem:[#allocation7 + $0x48] ss:$12 sps:$4 sm:$0xff]   ;;  %v4165_v16 = vld [vmem:[#allocation7 + $0x64] ss:$12 sps:$4 sm:$0xff]   ;;  %v4167_v17 = vld [vmem:[#allocation7 + $0x60] ss:$12 sps:$4 sm:$0xff]  }
  0xfe   : > { %517 = vadd.xlane.f32.xlu0 %v5082_v1  ;;  %v4168_v18 = vld [vmem:[#allocation7 + $0x7c] ss:$12 sps:$4 sm:$0xff]   ;;  %v4170_v19 = vld [vmem:[#allocation7 + $0x78] ss:$12 sps:$4 sm:$0xff]   ;;  %v4171_v20 = vld [vmem:[#allocation7 + $0x94] ss:$12 sps:$4 sm:$0xff]  }
  0xff   : > { %v4173_v21 = vld [vmem:[#allocation7 + $0x90] ss:$12 sps:$4 sm:$0xff]   ;;  %v4174_v22 = vld [vmem:[#allocation7 + $0xac] ss:$12 sps:$4 sm:$0xff]   ;;  %v4176_v23 = vld [vmem:[#allocation7 + $0xa8] ss:$12 sps:$4 sm:$0xff]  }
 0x100   : > { %534 = vadd.xlane.f32.xlu1 %v529_v4  ;;  %766 = vmatpush1.bf16.msra.mxu0 %v4158_v11  ;;  %v4177_v25 = vld [vmem:[#allocation7 + $0x8] ss:$12 sps:$4 sm:$0xff]   ;;  %v4178_v26 = vld [vmem:[#allocation7 + $0x20] ss:$12 sps:$4 sm:$0xff]   ;;  %v4179_v27 = vld [vmem:[#allocation7 + $0x38] ss:$12 sps:$4 sm:$0xff]  }
 0x101   : > { %767 = vmatprep.subr.bf16.mxu0 %v4159_v12  ;;  %3844 = vmatprep.subr.bf16.mxu1 %v4177_v25  ;;  %v4180_v28 = vld [vmem:[#allocation7 + $0x50] ss:$12 sps:$4 sm:$0xff]   ;;  %v4181_v29 = vld [vmem:[#allocation7 + $0x68] ss:$12 sps:$4 sm:$0xff]   ;;  %v4182_v30 = vld [vmem:[#allocation7 + $0x80] ss:$12 sps:$4 sm:$0xff]  }
 0x102   : > { %519 = vadd.xlane.f32.xlu0 %v5089_v5  ;;  %3845 = vmatpush3.bf16.msra.mxu1 %v4177_v25  ;;  %v4183_v31 = vld [vmem:[#allocation7 + $0x98] ss:$12 sps:$4 sm:$0xff]   ;;  %v4184_v32 = vld [vmem:[#allocation7 + $0xb0] ss:$12 sps:$4 sm:$0xff]   ;;  %v3541_v2 = vld [vmem:[%s5605_s2] ss:$0 sm:$0xff] }
 0x103   : > { %3846 = vmatprep.subr.bf16.mxu1 %v4178_v26  ;;  %v3542_v9 = vld [vmem:[%s5605_s2 + $0x1] ss:$0 sm:$0xff]  ;;  %s4703_s17 = smov 96   ;;  %s4704_s5 = smov 64   ;;  %vm1901_vm3 = vcmask 523264   ;;  %vm1906_vm4 = vcmask 785408  }
 0x104   : > { %521 = vadd.xlane.f32.xlu1 %v5092_v6  ;;  %768 = vmatpush1.bf16.msra.mxu0 %v4161_v13  ;;  %s4705_s18 = smov 32   ;;  %vm2042_vm5 = vcmask 1041408   ;;  %vm2063_vm6 = vcmask 1040384   ;;  %vm2070_vm7 = vcmask 1042432   ;;  %vm2077_vm8 = vcmask 1046528   ;;  %s5487_s23 = scalar_lea.vmem [#allocation14], %s5052_s24 }
 0x105   : > { %769 = vmatprep.subr.bf16.mxu0 %v4162_v14  ;;  %vm2096_vm9 = vcmask 1045504   ;;  %vm2115_vm10 = vcmask 1044480   ;;  %vm2134_vm11 = vcmask 1043456   ;;  %s5500_s9 = scalar_lea.vmem [#allocation15], %s5052_s24  ;;  %s3695_s0 = sshll.u32 %s4786_s19, 9 }
 0x106   : > { %536 = vadd.xlane.f32.xlu0 %v530_v7  ;;  %3847 = vmatpush3.bf16.msra.mxu1 %v4178_v26  ;;  %v618_v26 = vld [vmem:[%s5607_s4] sm:$0x7]  ;;  %s3323_s6 = sshll.u32 %s5487_s23, 4  ;;  %s5654_s25 = sld [smem:[#allocation30_spill]]  ;;  %s5515_s6 = int_to_ptr.vmem [resolvable:$true] %s3323_s6 }
 0x107   : > { %3848 = vmatprep.subr.bf16.mxu1 %v4179_v27  ;;  %s3304_s22 = scalar_lea.sflag [#allocation4], %s5049_s7  ;;  %s4569_s26 = scalar_lea.vmem %s5515_s6, 512 }
 0x108   : > { %538 = vadd.xlane.f32.xlu1 %v531_v8  ;;  %770 = vmatpush1.bf16.msra.mxu0 %v4164_v15  ;;  %p4570_p2 = scmp.ne.s32.totalorder %s5515_s6, %s4569_s26  ;;  %p5655_p13 = scmp.ne.s32.totalorder %s5641_s12, 0 }
 0x109   : > { %771 = vmatprep.subr.bf16.mxu0 %v4165_v16  ;;  %s4706_s10 = smov [#allocation14]  }
 0x10a   : > { %3849 = vmatpush3.bf16.msra.mxu1 %v4179_v27  ;;  %p4571_p6 = pnand %p4570_p2, %p5655_p13 }
 0x10b   : > { %3850 = vmatprep.subr.bf16.mxu1 %v4180_v28 }
 0x10c   : > { %772 = vmatpush1.bf16.msra.mxu0 %v4167_v17  ;;  %s5513_s28 = scalar_lea.hbm %s5654_s25, %s3695_s0  ;;  %p4572_p9 = pneg %p4571_p6 }
 0x10d   : > { %773 = vmatprep.subr.bf16.mxu0 %v4168_v18 }
 0x10e   : > { %3851 = vmatpush3.bf16.msra.mxu1 %v4180_v28 }
 0x10f   : > { %3852 = vmatprep.subr.bf16.mxu1 %v4181_v29 }
 0x110   : > { %774 = vmatpush1.bf16.msra.mxu0 %v4170_v19 }
 0x111   : > { %775 = vmatprep.subr.bf16.mxu0 %v4171_v20 }
 0x112   : > { %3853 = vmatpush3.bf16.msra.mxu1 %v4181_v29 }
 0x113   : > { %3854 = vmatprep.subr.bf16.mxu1 %v4182_v30 }
 0x114   : > { %776 = vmatpush1.bf16.msra.mxu0 %v4173_v21  ;;  %v4701_v21 = vmov 0.0  }
 0x115   : > { %777 = vmatprep.subr.bf16.mxu0 %v4174_v22  ;;  %v620_v22 = vlaneseq }
 0x116   : > { %3855 = vmatpush3.bf16.msra.mxu1 %v4182_v30 }
 0x117   : > { %3856 = vmatprep.subr.bf16.mxu1 %v4183_v31 }
 0x118   : > { %778 = vmatpush1.bf16.msra.mxu0 %v4176_v23  ;;  %v621_v23 = vshrl.u32 %v620_v22, 7 }
 0x119   : > { %3864 = vmatprep.subr.bf16.mxu0 %v4701_v21 }
 0x11a   : > { %3857 = vmatpush3.bf16.msra.mxu1 %v4183_v31  ;;  %v622_v25 = vsub.s32 0, %v621_v23  ;;  %v626_v27 = vsub.s32 1, %v621_v23 }
 0x11b   : > { %3858 = vmatprep.subr.bf16.mxu1 %v4184_v32 }
 0x11c   : > { %v623_v28 = vrot.slane %v618_v26, %v622_v25  ;;  %v627_v30 = vrot.slane %v618_v26, %v626_v27 }
 0x11e   : > { %3859 = vmatpush3.bf16.msra.mxu1 %v4184_v32  ;;  %v630_v32 = vsub.s32 2, %v621_v23 }
 0x11f   : > { %3876 = vmatprep.subr.bf16.mxu1 %v4701_v21 }
 0x187   : > { %v516_v33 = vpop.xlane.xlu0 %515 }
 0x188   : > { %v524_v34 = vmul.f32 0.0078125, %v516_v33 }
 0x189   : > { %v533_v35 = vpop.xlane.xlu1 %532 }
 0x18a   : > { %v544_v36 = vmul.f32 %v524_v34, %v524_v34  ;;  %v540_v37 = vmul.f32 0.0078125, %v533_v35  ;;  %v552_v60 = vsub.f32 %v5080_v0, %v524_v34 }
 0x18b   : > { %v518_v38 = vpop.xlane.xlu0 %517 }
 0x18c   : > { %v548_v39 = vsub.f32 %v540_v37, %v544_v36  ;;  %v525_v40 = vmul.f32 0.0078125, %v518_v38 }
 0x18d   : > { %v535_v41 = vpop.xlane.xlu1 %534 }
 0x18e   : > { %v556_v42 = vadd.f32 1e-05, %v548_v39  ;;  %v545_v43 = vmul.f32 %v525_v40, %v525_v40  ;;  %v541_v44 = vmul.f32 0.0078125, %v535_v41  ;;  %v553_v3 = vsub.f32 %v5082_v1, %v525_v40 }
 0x18f   : > { %v520_v45 = vpop.xlane.xlu0 %519  ;;  %v631_v40 = vrot.slane %v618_v26, %v630_v32 }
 0x190   : > { %4297 = vrsqrt.f32 %v556_v42  ;;  %v549_v46 = vsub.f32 %v541_v44, %v545_v43  ;;  %v526_v47 = vmul.f32 0.0078125, %v520_v45 }
 0x191   : > { %v522_v48 = vpop.xlane.xlu1 %521 }
 0x192   : > { %v557_v49 = vadd.f32 1e-05, %v549_v46  ;;  %v546_v50 = vmul.f32 %v526_v47, %v526_v47  ;;  %v527_v51 = vmul.f32 0.0078125, %v522_v48  ;;  %v554_v0 = vsub.f32 %v5089_v5, %v526_v47 }
 0x193   : > { %v537_v52 = vpop.xlane.xlu0 %536 }
 0x194   : > { %4299 = vrsqrt.f32 %v557_v49  ;;  %v547_v53 = vmul.f32 %v527_v51, %v527_v51  ;;  %v542_v54 = vmul.f32 0.0078125, %v537_v52  ;;  %v555_v11 = vsub.f32 %v5092_v6, %v527_v51 }
 0x195   : > { %v539_v55 = vpop.xlane.xlu1 %538 }
 0x196   : > { %v550_v56 = vsub.f32 %v542_v54, %v546_v50  ;;  %v543_v57 = vmul.f32 0.0078125, %v539_v55 }
 0x198   : > { %v558_v58 = vadd.f32 1e-05, %v550_v56  ;;  %v551_v59 = vsub.f32 %v543_v57, %v547_v53 }
 0x19a   : > { %v4298_v61 = vpop.eup %4297  ;;  %4301 = vrsqrt.f32 %v558_v58  ;;  %v559_v62 = vadd.f32 1e-05, %v551_v59 }
 0x19b   : > { %v564_v63 = vmul.f32 %v4298_v61, %v552_v60 }
 0x19c   : > { %4303 = vrsqrt.f32 %v559_v62 }
 0x19d   : > { %v572_v8 = vmul.f32 %v3541_v2, %v564_v63 }
 0x19e   : > { %v4300_v4 = vpop.eup %4299 }
 0x19f   : > { %v565_v7 = vmul.f32 %v4300_v4, %v553_v3  ;;  %v5111_v12 = vadd.f32 %v3542_v9, %v572_v8 }
 0x1a1   : > { %v573_v10 = vmul.f32 %v3541_v2, %v565_v7 }
 0x1a3   : > { %v5113_v13 = vadd.f32 %v3542_v9, %v573_v10 }
 0x1a4   : > { %v4302_v14 = vpop.eup %4301 }
 0x1a5   : > { %v584_v1 = vpack.c.bf16 %v5113_v13, %v5111_v12  ;;  %v566_v15 = vmul.f32 %v4302_v14, %v554_v0 }
 0x1a6   : > { %v4304_v16 = vpop.eup %4303 }
 0x1a7   : > { %796 = vmatmul.mubr.bf16.vlgmr.msra.gmra.mrb[0].mxu0 %v584_v1  ;;  %3860 = vmatprep.mubr.bf16.mxu1 %v584_v1  ;;  %v567_v17 = vmul.f32 %v4304_v16, %v555_v11  ;;  %v574_v18 = vmul.f32 %v3541_v2, %v566_v15 }
 0x1a8   : > { %805 = vmatprep.mubr.bf16.mxu0 %v4700_v24 }
 0x1a9   : > { %v575_v5 = vmul.f32 %v3541_v2, %v567_v17  ;;  %v5118_v19 = vadd.f32 %v3542_v9, %v574_v18 }
 0x1ab   : > { %v5120_v6 = vadd.f32 %v3542_v9, %v575_v5 }
 0x1ad   : > { %v585_v20 = vpack.c.bf16 %v5120_v6, %v5118_v19 }
 0x1af   : > { %806 = vmatmul.mubr.bf16.gmra.mrb[4].mxu0 %v585_v20  ;;  %3861 = vmatmul.mubr.bf16.vlgmr.msra.gmra.mrb[0].mxu1 %v585_v20 }
 0x1b0   : > { %3866 = vmatprep.mubr.msk.bf16.mxu0 %vm4702_vm0, %v4701_v21  ;;  %3878 = vmatprep.mubr.msk.bf16.mxu1 %vm4702_vm0, %v4701_v21 }
 0x27a   : > { %v797_v29 = vpop.f32.mrb[0].mxu0 }
 0x27b   : > { %v799_v31 = vpop.f32.mrb[1].mxu0  ;;  %v798_v34 = vadd.f32 %v797_v29, %v623_v28 }
 0x27c   : > { %v801_v33 = vpop.f32.mrb[2].mxu0  ;;  %v800_v37 = vadd.f32 %v799_v31, %v627_v30 }
 0x27d   : > { %v802_v35 = vadd.f32 %v801_v33, %v623_v28  ;;  %v803_v36 = vpop.f32.mrb[3].mxu0 }
 0x27e   : > { %v804_v38 = vadd.f32 %v803_v36, %v627_v30 }
 0x27f   : > { %v5133_v39 = vpack.c.bf16 %v802_v35, %v798_v34 }
 0x280   : > { %v5135_v41 = vpack.c.bf16 %v804_v38, %v800_v37 }
 0x282   : > { %v807_v42 = vpop.f32.mrb[4].mxu0  ;;  %v876_v43 = vsel %vm871_vm1, %v5135_v41, 0  ;;  %v3862_v44 = vpop.f32.mrb[0].mxu1 }
 0x283   : > { %v808_v45 = vadd.f32 %v807_v42, %v623_v28  ;;  %v809_v46 = vpop.f32.mrb[5].mxu0  ;;  %3865 = vmatpush3.bf16.xpose.msra.mxu0 %v876_v43  ;;  %v859_v47 = vadd.f32 %v3862_v44, %v631_v40  ;;  %v850_v48 = vpop.f32.mrb[1].mxu1 }
 0x284   : > { %v810_v49 = vadd.f32 %v809_v46, %v627_v30  ;;  %v811_v50 = vpop.f32.mrb[6].mxu0  ;;  %3870 = vmatprep.subr.bf16.mxu0 %v4701_v21  ;;  %v851_v51 = vadd.f32 %v850_v48, %v631_v40  ;;  %v3863_v52 = vpop.f32.mrb[2].mxu1 }
 0x285   : > { %v812_v53 = vadd.f32 %v811_v50, %v623_v28  ;;  %v813_v54 = vpop.f32.mrb[7].mxu0  ;;  %v862_v55 = vadd.f32 %v3863_v52, %v631_v40  ;;  %v853_v56 = vpop.f32.mrb[3].mxu1 }
 0x286   : > { %v814_v57 = vadd.f32 %v813_v54, %v627_v30  ;;  %v854_v58 = vadd.f32 %v853_v56, %v631_v40 }
 0x287   : > { %v5140_v59 = vpack.c.bf16 %v812_v53, %v808_v45  ;;  %v5142_v60 = vpack.c.bf16 %v862_v55, %v859_v47 }
 0x288   : > { %v5144_v61 = vpack.c.bf16 %v814_v57, %v810_v49  ;;  %v5146_v62 = vpack.c.bf16 %v854_v58, %v851_v51 }
 0x28a   : > { %3867 = vmatmul.mubr.msk.bf16.vlgmr.msra.gmra.mrb[8].mxu0 %vm871_vm1, %v5133_v39  ;;  %v923_v63 = vsel %vm871_vm1, %v5144_v61, 0  ;;  %3877 = vmatpush3.bf16.msra.mxu1 %v5146_v62 }
 0x28b   : > { %3871 = vmatpush3.bf16.xpose.msra.mxu0 %v923_v63  ;;  %3872 = vmatprep.mubr.msk.bf16.mxu0 %vm4702_vm0, %v4701_v21 }
 0x28c   : > { %3882 = vmatprep.subr.bf16.mxu0 %v4701_v21  ;;  %3888 = vmatprep.subr.bf16.mxu1 %v4701_v21 }
 0x292   : > { %3873 = vmatmul.mubr.msk.bf16.vlgmr.msra.gmra.mrb[12].mxu0 %vm871_vm1, %v5140_v59 }
 0x293   : > { %3883 = vmatpush3.bf16.msra.mxu0 %v5142_v60  ;;  %3884 = vmatprep.mubr.msk.bf16.mxu0 %vm4702_vm0, %v4701_v21 }
 0x294   : > { %3894 = vmatprep.subr.bf16.mxu0 %v4701_v21 }
 0x35d   : > { %v912_v2 = vpop.f32.mrb[8].mxu0 }
 0x35e   : > { %v966_v3 = vmul.f32 0.088388346, %v912_v2  ;;  %v3868_v4 = vpop.f32.mrb[9].mxu0 }
 0x35f   : > { %v915_v7 = vpop.f32.mrb[10].mxu0 }
 0x360   : > { %v967_v8 = vmul.f32 0.088388346, %v915_v7  ;;  %v3869_v9 = vpop.f32.mrb[11].mxu0  ;;  %v971_v0 = vsel %vm970_vm2, %v966_v3, -inf }
 0x361   : > { %972 = vmax.xlane.f32.xlu0 %v971_v0 }
 0x362   : > { %v974_v10 = vsel %vm970_vm2, %v967_v8, -inf }
 0x363   : > { %975 = vmax.xlane.f32.xlu1 %v974_v10 }
 0x365   : > { %v959_v11 = vpop.f32.mrb[12].mxu0 }
 0x366   : > { %v968_v14 = vmul.f32 0.088388346, %v959_v11  ;;  %v3874_v1 = vpop.f32.mrb[13].mxu0 }
 0x367   : > { %v962_v15 = vpop.f32.mrb[14].mxu0 }
 0x368   : > { %v969_v16 = vmul.f32 0.088388346, %v962_v15  ;;  %v977_v17 = vsel %vm970_vm2, %v968_v14, -inf  ;;  %v3875_v18 = vpop.f32.mrb[15].mxu0 }
 0x369   : > { %978 = vmax.xlane.f32.xlu0 %v977_v17 }
 0x36a   : > { %v980_v5 = vsel %vm970_vm2, %v969_v16, -inf }
 0x36b   : > { %981 = vmax.xlane.f32.xlu1 %v980_v5 }
 0x3ee   : > { %v973_v20 = vpop.xlane.xlu0 %972 }
 0x3ef   : > { %v983_v22 = vsub.f32 %v966_v3, %v973_v20 }
 0x3f0   : > { %v976_v23 = vpop.xlane.xlu1 %975 }
 0x3f1   : > { %v987_v25 = vmul.f32 1.442695, %v983_v22  ;;  %v984_v26 = vsub.f32 %v967_v8, %v976_v23 }
 0x3f3   : > { %4305 = vpow2.f32 %v987_v25  ;;  %v989_v27 = vmul.f32 1.442695, %v984_v26 }
 0x3f5   : > { %4307 = vpow2.f32 %v989_v27 }
 0x3f6   : > { %v979_v28 = vpop.xlane.xlu0 %978 }
 0x3f7   : > { %v985_v29 = vsub.f32 %v968_v14, %v979_v28 }
 0x3f8   : > { %v982_v37 = vpop.xlane.xlu1 %981 }
 0x3f9   : > { %v991_v30 = vmul.f32 1.442695, %v985_v29  ;;  %v986_v38 = vsub.f32 %v969_v16, %v982_v37 }
 0x3fb   : > { %4309 = vpow2.f32 %v991_v30  ;;  %v993_v40 = vmul.f32 1.442695, %v986_v38 }
 0x3fd   : > { %v4306_v31 = vpop.eup %4305  ;;  %4311 = vpow2.f32 %v993_v40 }
 0x3fe   : > { %v995_v32 = vsel %vm970_vm2, %v4306_v31, 0.0 }
 0x3ff   : > { %v4308_v33 = vpop.eup %4307  ;;  %996 = vadd.xlane.f32.xlu0 %v995_v32 }
 0x400   : > { %v998_v34 = vsel %vm970_vm2, %v4308_v33, 0.0 }
 0x401   : > { %999 = vadd.xlane.f32.xlu1 %v998_v34 }
 0x405   : > { %v4310_v35 = vpop.eup %4309 }
 0x406   : > { %v1001_v36 = vsel %vm970_vm2, %v4310_v35, 0.0 }
 0x407   : > { %1002 = vadd.xlane.f32.xlu0 %v1001_v36  ;;  %v4312_v42 = vpop.eup %4311 }
 0x408   : > { %v1004_v43 = vsel %vm970_vm2, %v4312_v42, 0.0 }
 0x412   : > { %1162 = vrot.lane.b32.xlu1 %v5144_v61, %s4703_s17 }
 0x41d   : > { %1109 = vrot.lane.b32.xlu0 %v5135_v41, %s4703_s17 }
 0x436   : > { %1005 = vadd.xlane.f32.xlu1 %v1004_v43 }
 0x447   : > { %1106 = vrot.lane.b32.xlu1 %v5133_v39, %s4703_s17 }
 0x44b   : > { %1159 = vrot.lane.b32.xlu1 %v5140_v59, %s4703_s17 }
 0x48c   : > { %v997_v44 = vpop.xlane.xlu0 %996 }
 0x48d   : > { %4313 = vrcp.f32 %v997_v44 }
 0x48e   : > { %v1000_v45 = vpop.xlane.xlu1 %999 }
 0x48f   : > { %4315 = vrcp.f32 %v1000_v45 }
 0x492   : > { %v1163_v54 = vpop.permute.xlu1 %1162 }
 0x493   : > { %v1168_v4 = vsel %vm871_vm1, %v1163_v54, 0 }
 0x494   : > { %v1003_v46 = vpop.xlane.xlu0 %1002 }
 0x495   : > { %4317 = vrcp.f32 %v1003_v46 }
 0x497   : > { %v4314_v47 = vpop.eup %4313 }
 0x498   : > { %v1011_v49 = vmul.f32 %v4314_v47, %v4306_v31  ;;  %v1110_v51 = vpop.permute.xlu0 %1109 }
 0x499   : > { %v4316_v48 = vpop.eup %4315  ;;  %v1115_v53 = vsel %vm871_vm1, %v1110_v51, 0 }
 0x49a   : > { %v1012_v50 = vmul.f32 %v4316_v48, %v4308_v33 }
 0x49c   : > { %v1015_v52 = vpack.c.bf16 %v1012_v50, %v1011_v49 }
 0x49e   : > { %3879 = vmatmul.mubr.msk.bf16.vlgmr.msra.gmra.mrb[4].mxu1 %vm970_vm2, %v1015_v52 }
 0x49f   : > { %3889 = vmatpush3.bf16.xpose.msra.mxu1 %v1115_v53  ;;  %3890 = vmatprep.mubr.msk.bf16.mxu1 %vm4702_vm0, %v4701_v21  ;;  %v4318_v57 = vpop.eup %4317 }
 0x4a0   : > { %3900 = vmatprep.subr.bf16.mxu1 %v4701_v21  ;;  %v1013_v63 = vmul.f32 %v4318_v57, %v4310_v35 }
 0x4c3   : > { %v1006_v55 = vpop.xlane.xlu1 %1005 }
 0x4c4   : > { %4319 = vrcp.f32 %v1006_v55 }
 0x4c7   : > { %v1107_v56 = vpop.permute.xlu1 %1106 }
 0x4c8   : > { %3891 = vmatmul.mubr.msk.bf16.vlgmr.msra.gmra.mrb[8].mxu1 %vm871_vm1, %v1107_v56 }
 0x4c9   : > { %3902 = vmatprep.mubr.msk.bf16.mxu1 %vm4702_vm0, %v4701_v21 }
 0x4cb   : > { %v1160_v7 = vpop.permute.xlu1 %1159 }
 0x4ce   : > { %v4320_v58 = vpop.eup %4319 }
 0x4cf   : > { %v1014_v2 = vmul.f32 %v4320_v58, %v4312_v42 }
 0x4d1   : > { %v1016_v3 = vpack.c.bf16 %v1014_v2, %v1013_v63 }
 0x4d3   : > { %3885 = vmatmul.mubr.msk.bf16.vlgmr.msra.gmra.mrb[16].mxu0 %vm970_vm2, %v1016_v3 }
 0x4d4   : > { %3895 = vmatpush3.bf16.xpose.msra.mxu0 %v1168_v4  ;;  %3896 = vmatprep.mubr.msk.bf16.mxu0 %vm4702_vm0, %v4701_v21 }
 0x4d5   : > { %3906 = vmatprep.subr.bf16.mxu0 %v4701_v21 }
 0x4db   : > { %3897 = vmatmul.mubr.msk.bf16.vlgmr.msra.gmra.mrb[20].mxu0 %vm871_vm1, %v1160_v7 }
 0x4dc   : > { %3908 = vmatprep.mubr.msk.bf16.mxu0 %vm4702_vm0, %v4701_v21 }
 0x571   : > { %v5195_v8 = vpop.f32.mrb[4].mxu1 }
 0x572   : > { %v3880_v9 = vpop.f32.mrb[5].mxu1 }
 0x573   : > { %v5197_v0 = vpop.f32.mrb[6].mxu1 }
 0x574   : > { %v3881_v10 = vpop.f32.mrb[7].mxu1 }
 0x59b   : > { %v1151_v11 = vpop.f32.mrb[8].mxu1 }
 0x59c   : > { %v1211_v14 = vmul.f32 0.088388346, %v1151_v11  ;;  %v3892_v1 = vpop.f32.mrb[9].mxu1 }
 0x59d   : > { %v1154_v15 = vpop.f32.mrb[10].mxu1 }
 0x59e   : > { %v1212_v16 = vmul.f32 0.088388346, %v1154_v15  ;;  %v3893_v17 = vpop.f32.mrb[11].mxu1  ;;  %v1215_v18 = vsel %vm970_vm2, %v1211_v14, -inf }
 0x59f   : > { %1216 = vmax.xlane.f32.xlu0 %v1215_v18 }
 0x5a0   : > { %v1218_v5 = vsel %vm970_vm2, %v1212_v16, -inf }
 0x5a1   : > { %1219 = vmax.xlane.f32.xlu1 %v1218_v5 }
 0x5a6   : > { %v5201_v20 = vpop.f32.mrb[16].mxu0 }
 0x5a7   : > { %v3886_v22 = vpop.f32.mrb[17].mxu0 }
 0x5a8   : > { %v5203_v23 = vpop.f32.mrb[18].mxu0 }
 0x5a9   : > { %v3887_v25 = vpop.f32.mrb[19].mxu0 }
 0x5ae   : > { %v1204_v26 = vpop.f32.mrb[20].mxu0 }
 0x5af   : > { %v1213_v27 = vmul.f32 0.088388346, %v1204_v26  ;;  %v3898_v28 = vpop.f32.mrb[21].mxu0 }
 0x5b0   : > { %v1207_v29 = vpop.f32.mrb[22].mxu0 }
 0x5b1   : > { %v1214_v30 = vmul.f32 0.088388346, %v1207_v29  ;;  %v3899_v31 = vpop.f32.mrb[23].mxu0  ;;  %v1221_v32 = vsel %vm970_vm2, %v1213_v27, -inf }
 0x5b2   : > { %1222 = vmax.xlane.f32.xlu0 %v1221_v32 }
 0x5b3   : > { %v1224_v33 = vsel %vm970_vm2, %v1214_v30, -inf }
 0x5b6   : > { %1225 = vmax.xlane.f32.xlu0 %v1224_v33 }
 0x62c   : > { %v1217_v34 = vpop.xlane.xlu0 %1216 }
 0x62d   : > { %v1227_v35 = vsub.f32 %v1211_v14, %v1217_v34 }
 0x62e   : > { %v1220_v36 = vpop.xlane.xlu1 %1219 }
 0x62f   : > { %v1231_v37 = vmul.f32 1.442695, %v1227_v35  ;;  %v1228_v38 = vsub.f32 %v1212_v16, %v1220_v36 }
 0x631   : > { %4321 = vpow2.f32 %v1231_v37  ;;  %v1233_v40 = vmul.f32 1.442695, %v1228_v38 }
 0x633   : > { %4323 = vpow2.f32 %v1233_v40 }
 0x63b   : > { %v4322_v42 = vpop.eup %4321 }
 0x63c   : > { %v1239_v43 = vsel %vm970_vm2, %v4322_v42, 0.0 }
 0x63d   : > { %v4324_v44 = vpop.eup %4323  ;;  %1240 = vadd.xlane.f32.xlu0 %v1239_v43 }
 0x63e   : > { %v1242_v45 = vsel %vm970_vm2, %v4324_v44, 0.0 }
 0x63f   : > { %1243 = vadd.xlane.f32.xlu1 %v1242_v45  ;;  %v1223_v46 = vpop.xlane.xlu0 %1222 }
 0x640   : > { %v1229_v47 = vsub.f32 %v1213_v27, %v1223_v46 }
 0x642   : > { %v1235_v48 = vmul.f32 1.442695, %v1229_v47 }
 0x643   : > { %v1226_v51 = vpop.xlane.xlu0 %1225 }
 0x644   : > { %4325 = vpow2.f32 %v1235_v48  ;;  %v1230_v52 = vsub.f32 %v1214_v30, %v1226_v51 }
 0x646   : > { %v1237_v53 = vmul.f32 1.442695, %v1230_v52 }
 0x648   : > { %4327 = vpow2.f32 %v1237_v53 }
 0x64e   : > { %v4326_v49 = vpop.eup %4325 }
 0x64f   : > { %v1245_v50 = vsel %vm970_vm2, %v4326_v49, 0.0 }
 0x650   : > { %1310 = vrot.lane.b32.xlu1 %v5142_v60, %s4703_s17  ;;  %1246 = vadd.xlane.f32.xlu0 %v1245_v50 }
 0x652   : > { %v4328_v54 = vpop.eup %4327 }
 0x653   : > { %v1248_v55 = vsel %vm970_vm2, %v4328_v54, 0.0 }
 0x654   : > { %1359 = vrot.lane.b32.xlu1 %v5135_v41, %s4704_s5 }
 0x666   : > { %1262 = vrot.lane.b32.xlu0 %v5146_v62, %s4703_s17 }
 0x66a   : > { %1357 = vrot.lane.b32.xlu0 %v5133_v39, %s4704_s5 }
 0x678   : > { %1249 = vadd.xlane.f32.xlu1 %v1248_v55 }
 0x689   : > { %1410 = vrot.lane.b32.xlu1 %v5144_v61, %s4704_s5 }
 0x68d   : > { %1408 = vrot.lane.b32.xlu1 %v5140_v59, %s4704_s5 }
 0x6ca   : > { %v1241_v58 = vpop.xlane.xlu0 %1240 }
 0x6cc   : > { %v1244_v56 = vpop.xlane.xlu1 %1243 }
 0x6cd   : > { %4329 = vrcp.f32 %v1244_v56 }
 0x6ce   : > { %4331 = vrcp.f32 %v1241_v58 }
 0x6d0   : > { %v1311_v57 = vpop.permute.xlu1 %1310 }
 0x6d1   : > { %3907 = vmatpush3.bf16.msra.mxu0 %v1311_v57 }
 0x6d2   : > { %3918 = vmatprep.subr.bf16.mxu0 %v4701_v21 }
 0x6d4   : > { %v1360_v11 = vpop.permute.xlu1 %1359 }
 0x6d5   : > { %v1365_v14 = vsel %vm871_vm1, %v1360_v11, 0 }
 0x6d7   : > { %v4330_v63 = vpop.eup %4329 }
 0x6d8   : > { %v4332_v3 = vpop.eup %4331  ;;  %v1256_v4 = vmul.f32 %v4330_v63, %v4324_v44 }
 0x6d9   : > { %v1255_v7 = vmul.f32 %v4332_v3, %v4322_v42 }
 0x6db   : > { %v1259_v10 = vpack.c.bf16 %v1256_v4, %v1255_v7 }
 0x6dd   : > { %v1247_v2 = vpop.xlane.xlu0 %1246 }
 0x6de   : > { %4333 = vrcp.f32 %v1247_v2 }
 0x6e1   : > { %v1263_v9 = vpop.permute.xlu0 %1262 }
 0x6e2   : > { %3901 = vmatpush3.bf16.msra.mxu1 %v1263_v9 }
 0x6e3   : > { %3912 = vmatprep.subr.bf16.mxu1 %v4701_v21 }
 0x6e5   : > { %3903 = vmatmul.mubr.msk.bf16.vlgmr.msra.gmra.mrb[12].mxu1 %vm970_vm2, %v1259_v10  ;;  %v1358_v1 = vpop.permute.xlu0 %1357 }
 0x6e6   : > { %3914 = vmatprep.mubr.msk.bf16.mxu1 %vm4702_vm0, %v4701_v21 }
 0x6e8   : > { %v4334_v16 = vpop.eup %4333 }
 0x6e9   : > { %v1257_v18 = vmul.f32 %v4334_v16, %v4326_v49 }
 0x6eb   : > { %3913 = vmatpush3.bf16.xpose.msra.mxu1 %v1365_v14 }
 0x6ec   : > { %3924 = vmatprep.subr.bf16.mxu1 %v4701_v21 }
 0x6f2   : > { %3915 = vmatmul.mubr.msk.bf16.vlgmr.msra.gmra.mrb[16].mxu1 %vm871_vm1, %v1358_v1 }
 0x6f3   : > { %3926 = vmatprep.mubr.msk.bf16.mxu1 %vm4702_vm0, %v4701_v21 }
 0x705   : > { %v1250_v15 = vpop.xlane.xlu1 %1249 }
 0x706   : > { %4335 = vrcp.f32 %v1250_v15 }
 0x709   : > { %v1411_v22 = vpop.permute.xlu1 %1410 }
 0x70a   : > { %v1416_v26 = vsel %vm871_vm1, %v1411_v22, 0 }
 0x70d   : > { %v1409_v27 = vpop.permute.xlu1 %1408 }
 0x710   : > { %v4336_v17 = vpop.eup %4335 }
 0x711   : > { %v1258_v5 = vmul.f32 %v4336_v17, %v4328_v54 }
 0x713   : > { %v1260_v25 = vpack.c.bf16 %v1258_v5, %v1257_v18 }
 0x715   : > { %3909 = vmatmul.mubr.msk.bf16.vlgmr.msra.gmra.mrb[24].mxu0 %vm970_vm2, %v1260_v25 }
 0x716   : > { %3919 = vmatpush3.bf16.xpose.msra.mxu0 %v1416_v26  ;;  %3920 = vmatprep.mubr.msk.bf16.mxu0 %vm4702_vm0, %v4701_v21 }
 0x717   : > { %3930 = vmatprep.subr.bf16.mxu0 %v4701_v21 }
 0x71d   : > { %3921 = vmatmul.mubr.msk.bf16.vlgmr.msra.gmra.mrb[28].mxu0 %vm871_vm1, %v1409_v27 }
 0x71e   : > { %3932 = vmatprep.mubr.msk.bf16.mxu0 %vm4702_vm0, %v4701_v21 }
 0x7b8   : > { %v5241_v28 = vpop.f32.mrb[12].mxu1 }
 0x7b9   : > { %v3904_v29 = vpop.f32.mrb[13].mxu1 }
 0x7ba   : > { %v5243_v30 = vpop.f32.mrb[14].mxu1 }
 0x7bb   : > { %v4123_v31 = vpack.i.bf16 %v5243_v30, %v5241_v28  ;;  %v3905_v32 = vpop.f32.mrb[15].mxu1 }
 0x7c5   : > { %v1401_v33 = vpop.f32.mrb[16].mxu1 }
 0x7c6   : > { %v1459_v34 = vmul.f32 0.088388346, %v1401_v33  ;;  %v3916_v35 = vpop.f32.mrb[17].mxu1 }
 0x7c7   : > { %v1404_v36 = vpop.f32.mrb[18].mxu1 }
 0x7c8   : > { %v1460_v37 = vmul.f32 0.088388346, %v1404_v36  ;;  %v3917_v38 = vpop.f32.mrb[19].mxu1  ;;  %v1463_v40 = vsel %vm970_vm2, %v1459_v34, -inf }
 0x7c9   : > { %1464 = vmax.xlane.f32.xlu0 %v1463_v40 }
 0x7ca   : > { %v1466_v42 = vsel %vm970_vm2, %v1460_v37, -inf }
 0x7cb   : > { %1467 = vmax.xlane.f32.xlu1 %v1466_v42 }
 0x7e8   : > { %v5249_v43 = vpop.f32.mrb[24].mxu0 }
 0x7e9   : > { %v3910_v44 = vpop.f32.mrb[25].mxu0 }
 0x7ea   : > { %v5251_v45 = vpop.f32.mrb[26].mxu0 }
 0x7eb   : > { %v4128_v46 = vpack.i.bf16 %v5251_v45, %v5249_v43  ;;  %v3911_v47 = vpop.f32.mrb[27].mxu0 }
 0x7f0   : > { %v1452_v48 = vpop.f32.mrb[28].mxu0 }
 0x7f1   : > { %v1461_v49 = vmul.f32 0.088388346, %v1452_v48  ;;  %v3922_v50 = vpop.f32.mrb[29].mxu0 }
 0x7f2   : > { %v1455_v51 = vpop.f32.mrb[30].mxu0 }
 0x7f3   : > { %v1462_v52 = vmul.f32 0.088388346, %v1455_v51  ;;  %v3923_v53 = vpop.f32.mrb[31].mxu0  ;;  %v1469_v54 = vsel %vm970_vm2, %v1461_v49, -inf }
 0x7f4   : > { %1470 = vmax.xlane.f32.xlu0 %v1469_v54 }
 0x7f5   : > { %v1472_v55 = vsel %vm970_vm2, %v1462_v52, -inf }
 0x7f8   : > { %1473 = vmax.xlane.f32.xlu0 %v1472_v55 }
 0x856   : > { %v1465_v56 = vpop.xlane.xlu0 %1464 }
 0x857   : > { %v1475_v57 = vsub.f32 %v1459_v34, %v1465_v56 }
 0x858   : > { %v1468_v58 = vpop.xlane.xlu1 %1467 }
 0x859   : > { %v1479_v63 = vmul.f32 1.442695, %v1475_v57  ;;  %v1476_v2 = vsub.f32 %v1460_v37, %v1468_v58 }
 0x85b   : > { %4337 = vpow2.f32 %v1479_v63  ;;  %v1481_v3 = vmul.f32 1.442695, %v1476_v2 }
 0x85d   : > { %4339 = vpow2.f32 %v1481_v3 }
 0x865   : > { %v4338_v4 = vpop.eup %4337 }
 0x866   : > { %v1487_v7 = vsel %vm970_vm2, %v4338_v4, 0.0 }
 0x867   : > { %v4340_v9 = vpop.eup %4339  ;;  %1488 = vadd.xlane.f32.xlu0 %v1487_v7 }
 0x868   : > { %v1490_v10 = vsel %vm970_vm2, %v4340_v9, 0.0 }
 0x869   : > { %1491 = vadd.xlane.f32.xlu1 %v1490_v10 }
 0x87a   : > { %1556 = vrot.lane.b32.xlu1 %v5142_v60, %s4704_s5 }
 0x87e   : > { %1605 = vrot.lane.b32.xlu1 %v5135_v41, %s4705_s18 }
 0x881   : > { %v1471_v11 = vpop.xlane.xlu0 %1470 }
 0x882   : > { %v1477_v14 = vsub.f32 %v1461_v49, %v1471_v11 }
 0x884   : > { %v1483_v1 = vmul.f32 1.442695, %v1477_v14 }
 0x885   : > { %v1474_v15 = vpop.xlane.xlu0 %1473 }
 0x886   : > { %4341 = vpow2.f32 %v1483_v1  ;;  %v1478_v16 = vsub.f32 %v1462_v52, %v1474_v15 }
 0x888   : > { %v1485_v18 = vmul.f32 1.442695, %v1478_v16 }
 0x88a   : > { %4343 = vpow2.f32 %v1485_v18 }
 0x890   : > { %v4342_v17 = vpop.eup %4341 }
 0x891   : > { %v1493_v5 = vsel %vm970_vm2, %v4342_v17, 0.0 }
 0x892   : > { %1494 = vadd.xlane.f32.xlu0 %v1493_v5 }
 0x894   : > { %v4344_v22 = vpop.eup %4343 }
 0x895   : > { %v1496_v25 = vsel %vm970_vm2, %v4344_v22, 0.0 }
 0x8a2   : > { %1497 = vadd.xlane.f32.xlu1 %v1496_v25 }
 0x8a8   : > { %1509 = vrot.lane.b32.xlu0 %v5146_v62, %s4704_s5 }
 0x8ac   : > { %1603 = vrot.lane.b32.xlu0 %v5133_v39, %s4705_s18 }
 0x8b3   : > { %1656 = vrot.lane.b32.xlu1 %v5144_v61, %s4705_s18 }
 0x8b7   : > { %1654 = vrot.lane.b32.xlu1 %v5140_v59, %s4705_s18 }
 0x8f4   : > { %v1489_v27 = vpop.xlane.xlu0 %1488 }
 0x8f6   : > { %v1492_v41 = vpop.xlane.xlu1 %1491 }
 0x8f7   : > { %4345 = vrcp.f32 %v1492_v41 }
 0x8f8   : > { %4347 = vrcp.f32 %v1489_v27 }
 0x8fa   : > { %v1557_v26 = vpop.permute.xlu1 %1556 }
 0x8fb   : > { %3931 = vmatpush3.bf16.msra.mxu0 %v1557_v26 }
 0x8fc   : > { %3942 = vmatprep.subr.bf16.mxu0 %v4701_v21 }
 0x8fe   : > { %v1606_v59 = vpop.permute.xlu1 %1605 }
 0x8ff   : > { %v1611_v61 = vsel %vm871_vm1, %v1606_v59, 0 }
 0x901   : > { %v4346_v29 = vpop.eup %4345 }
 0x902   : > { %v4348_v33 = vpop.eup %4347  ;;  %v1504_v34 = vmul.f32 %v4346_v29, %v4340_v9 }
 0x903   : > { %v1503_v35 = vmul.f32 %v4348_v33, %v4338_v4 }
 0x905   : > { %v1507_v36 = vpack.c.bf16 %v1504_v34, %v1503_v35 }
 0x91f   : > { %v1495_v32 = vpop.xlane.xlu0 %1494 }
 0x920   : > { %4349 = vrcp.f32 %v1495_v32 }
 0x923   : > { %v1510_v39 = vpop.permute.xlu0 %1509 }
 0x924   : > { %3925 = vmatpush3.bf16.msra.mxu1 %v1510_v39 }
 0x925   : > { %3936 = vmatprep.subr.bf16.mxu1 %v4701_v21 }
 0x927   : > { %3927 = vmatmul.mubr.msk.bf16.vlgmr.msra.gmra.mrb[20].mxu1 %vm970_vm2, %v1507_v36  ;;  %v1604_v38 = vpop.permute.xlu0 %1603 }
 0x928   : > { %3938 = vmatprep.mubr.msk.bf16.mxu1 %vm4702_vm0, %v4701_v21 }
 0x92a   : > { %v4350_v40 = vpop.eup %4349 }
 0x92b   : > { %v1505_v44 = vmul.f32 %v4350_v40, %v4342_v17 }
 0x92d   : > { %3937 = vmatpush3.bf16.xpose.msra.mxu1 %v1611_v61 }
 0x92e   : > { %3948 = vmatprep.subr.bf16.mxu1 %v4701_v21 }
 0x92f   : > { %v1498_v37 = vpop.xlane.xlu1 %1497 }
 0x930   : > { %4351 = vrcp.f32 %v1498_v37 }
 0x933   : > { %v1657_v48 = vpop.permute.xlu1 %1656 }
 0x934   : > { %3939 = vmatmul.mubr.msk.bf16.vlgmr.msra.gmra.mrb[24].mxu1 %vm871_vm1, %v1604_v38  ;;  %v1662_v50 = vsel %vm871_vm1, %v1657_v48, 0 }
 0x935   : > { %3950 = vmatprep.mubr.msk.bf16.mxu1 %vm4702_vm0, %v4701_v21 }
 0x937   : > { %v1655_v51 = vpop.permute.xlu1 %1654 }
 0x93a   : > { %v4352_v42 = vpop.eup %4351 }
 0x93b   : > { %v1506_v47 = vmul.f32 %v4352_v42, %v4344_v22 }
 0x93d   : > { %v1508_v49 = vpack.c.bf16 %v1506_v47, %v1505_v44 }
 0x93f   : > { %3933 = vmatmul.mubr.msk.bf16.vlgmr.msra.gmra.mrb[32].mxu0 %vm970_vm2, %v1508_v49 }
 0x940   : > { %3943 = vmatpush3.bf16.xpose.msra.mxu0 %v1662_v50  ;;  %3944 = vmatprep.mubr.msk.bf16.mxu0 %vm4702_vm0, %v4701_v21 }
 0x941   : > { %3954 = vmatprep.subr.bf16.mxu0 %v4701_v21 }
 0x947   : > { %3945 = vmatmul.mubr.msk.bf16.vlgmr.msra.gmra.mrb[36].mxu0 %vm871_vm1, %v1655_v51 }
 0x948   : > { %3956 = vmatprep.mubr.msk.bf16.mxu0 %vm4702_vm0, %v4701_v21 }
 0x9fa   : > { %v1549_v52 = vpop.f32.mrb[20].mxu1 }
 0x9fb   : > { %v3928_v53 = vpop.f32.mrb[21].mxu1 }
 0x9fc   : > { %v1552_v54 = vpop.f32.mrb[22].mxu1 }
 0x9fd   : > { %v4133_v55 = vpack.i.bf16 %v1552_v54, %v1549_v52  ;;  %v3929_v56 = vpop.f32.mrb[23].mxu1 }
 0xa07   : > { %v1647_v57 = vpop.f32.mrb[24].mxu1 }
 0xa08   : > { %v1705_v58 = vmul.f32 0.088388346, %v1647_v57  ;;  %v3940_v63 = vpop.f32.mrb[25].mxu1 }
 0xa09   : > { %v1650_v2 = vpop.f32.mrb[26].mxu1  ;;  %v4185_v63 = vld [vmem:[#allocation8] sm:$0xff]  }
 0xa0a   : > { %v1706_v3 = vmul.f32 0.088388346, %v1650_v2  ;;  %v3941_v4 = vpop.f32.mrb[27].mxu1  ;;  %v1709_v7 = vsel %vm970_vm2, %v1705_v58, -inf  ;;  %v4186_v2 = vld [vmem:[#allocation8 + $0x8] sm:$0xff]  }
 0xa0b   : > { %1710 = vmax.xlane.f32.xlu0 %v1709_v7  ;;  %v4188_v4 = vld [vmem:[#allocation8 + $0x18] sm:$0xff]   ;;  %v4189_v7 = vld [vmem:[#allocation8 + $0x20] sm:$0xff]  }
 0xa0c   : > { %v1712_v9 = vsel %vm970_vm2, %v1706_v3, -inf }
 0xa0d   : > { %1713 = vmax.xlane.f32.xlu1 %v1712_v9  ;;  %v4190_v9 = vld [vmem:[#allocation8 + $0x28] sm:$0xff]  }
 0xa12   : > { %v1596_v10 = vpop.f32.mrb[32].mxu0 }
 0xa13   : > { %v3934_v11 = vpop.f32.mrb[33].mxu0 }
 0xa14   : > { %v1599_v21 = vpop.f32.mrb[34].mxu0 }
 0xa15   : > { %v4138_v14 = vpack.i.bf16 %v1599_v21, %v1596_v10  ;;  %v3935_v1 = vpop.f32.mrb[35].mxu0  ;;  %v4191_v10 = vld [vmem:[#allocation8 + $0x30] sm:$0xff]  }
 0xa1a   : > { %v1698_v15 = vpop.f32.mrb[36].mxu0 }
 0xa1b   : > { %v1707_v16 = vmul.f32 0.088388346, %v1698_v15  ;;  %v3946_v17 = vpop.f32.mrb[37].mxu0 }
 0xa1c   : > { %v1701_v18 = vpop.f32.mrb[38].mxu0  ;;  %v4193_v17 = vld [vmem:[#allocation10] ss:$16 sps:$4 sm:$0xff]  }
 0xa1d   : > { %v1708_v5 = vmul.f32 0.088388346, %v1701_v18  ;;  %v3947_v22 = vpop.f32.mrb[39].mxu0  ;;  %v1715_v25 = vsel %vm970_vm2, %v1707_v16, -inf  ;;  %v4195_v18 = vld [vmem:[#allocation10 + $0x4] ss:$16 sps:$4 sm:$0xff]  }
 0xa1e   : > { %1716 = vmax.xlane.f32.xlu0 %v1715_v25 }
 0xa1f   : > { %v1718_v41 = vsel %vm970_vm2, %v1708_v5, -inf }
 0xa22   : > { %1719 = vmax.xlane.f32.xlu0 %v1718_v41 }
 0xa98   : > { %v1711_v26 = vpop.xlane.xlu0 %1710 }
 0xa99   : > { %v1721_v27 = vsub.f32 %v1705_v58, %v1711_v26 }
 0xa9a   : > { %v1714_v29 = vpop.xlane.xlu1 %1713 }
 0xa9b   : > { %v1725_v32 = vmul.f32 1.442695, %v1721_v27  ;;  %v1722_v33 = vsub.f32 %v1706_v3, %v1714_v29  ;;  %v4187_v3 = vld [vmem:[#allocation8 + $0x10] sm:$0xff]  }
 0xa9d   : > { %4353 = vpow2.f32 %v1725_v32  ;;  %v1727_v34 = vmul.f32 1.442695, %v1722_v33 }
 0xa9f   : > { %4355 = vpow2.f32 %v1727_v34 }
 0xaa7   : > { %v4354_v35 = vpop.eup %4353 }
 0xaa8   : > { %v1733_v39 = vsel %vm970_vm2, %v4354_v35, 0.0 }
 0xaa9   : > { %v4356_v36 = vpop.eup %4355  ;;  %1734 = vadd.xlane.f32.xlu0 %v1733_v39 }
 0xaaa   : > { %v1736_v59 = vsel %vm970_vm2, %v4356_v36, 0.0 }
 0xaab   : > { %1737 = vadd.xlane.f32.xlu1 %v1736_v59  ;;  %v1717_v61 = vpop.xlane.xlu0 %1716 }
 0xaac   : > { %v1723_v37 = vsub.f32 %v1707_v16, %v1717_v61  ;;  %v4192_v16 = vld [vmem:[#allocation8 + $0x38] sm:$0xff]  }
 0xaae   : > { %v1729_v38 = vmul.f32 1.442695, %v1723_v37 }
 0xaaf   : > { %v1720_v40 = vpop.xlane.xlu0 %1719 }
 0xab0   : > { %4357 = vpow2.f32 %v1729_v38  ;;  %v1724_v42 = vsub.f32 %v1708_v5, %v1720_v40  ;;  %v4198_v5 = vld [vmem:[#allocation10 + $0xc] ss:$16 sps:$4 sm:$0xff]  }
 0xab2   : > { %v1731_v44 = vmul.f32 1.442695, %v1724_v42 }
 0xab4   : > { %4359 = vpow2.f32 %v1731_v44 }
 0xaba   : > { %v4358_v47 = vpop.eup %4357 }
 0xabb   : > { %v1739_v48 = vsel %vm970_vm2, %v4358_v47, 0.0 }
 0xabc   : > { %1740 = vadd.xlane.f32.xlu0 %v1739_v48 }
 0xabe   : > { %v4360_v49 = vpop.eup %4359 }
 0xabf   : > { %v1742_v50 = vsel %vm970_vm2, %v4360_v49, 0.0 }
 0xac0   : > { %1743 = vadd.xlane.f32.xlu1 %v1742_v50 }
 0xad1   : > { %1802 = vrot.lane.b32.xlu1 %v5142_v60, %s4705_s18 }
 0xad2   : > { %1755 = vrot.lane.b32.xlu0 %v5146_v62, %s4705_s18 }
 0xad5   : > { %4124 = vrot.lane.b32.xlu1 %v4123_v31, %s4705_s18 }
 0xad6   : > { %4134 = vrot.lane.b32.xlu0 %v4133_v55, %s4704_s5 }
 0xad9   : > { %4129 = vrot.lane.b32.xlu1 %v4128_v46, %s4705_s18 }
 0xadd   : > { %4139 = vrot.lane.b32.xlu1 %v4138_v14, %s4704_s5 }
 0xb36   : > { %v1735_v52 = vpop.xlane.xlu0 %1734 }
 0xb38   : > { %v1738_v51 = vpop.xlane.xlu1 %1737 }
 0xb39   : > { %4361 = vrcp.f32 %v1738_v51 }
 0xb3a   : > { %4363 = vrcp.f32 %v1735_v52 }
 0xb43   : > { %v4362_v60 = vpop.eup %4361 }
 0xb44   : > { %v4364_v53 = vpop.eup %4363  ;;  %v1750_v54 = vmul.f32 %v4362_v60, %v4356_v36 }
 0xb45   : > { %v1749_v28 = vmul.f32 %v4364_v53, %v4354_v35 }
 0xb47   : > { %v1753_v55 = vpack.c.bf16 %v1750_v54, %v1749_v28 }
 0xb49   : > { %v1741_v62 = vpop.xlane.xlu0 %1740 }
 0xb4a   : > { %4365 = vrcp.f32 %v1741_v62 }
 0xb4d   : > { %v1744_v30 = vpop.xlane.xlu1 %1743  ;;  %v1756_v31 = vpop.permute.xlu0 %1755 }
 0xb4e   : > { %4367 = vrcp.f32 %v1744_v30  ;;  %3949 = vmatpush3.bf16.msra.mxu1 %v1756_v31 }
 0xb4f   : > { %3960 = vmatprep.subr.bf16.mxu1 %v4185_v63 }
 0xb51   : > { %v1803_v56 = vpop.permute.xlu1 %1802  ;;  %3951 = vmatmul.mubr.msk.bf16.vlgmr.msra.gmra.mrb[28].mxu1 %vm970_vm2, %v1753_v55  ;;  %v4135_v34 = vpop.permute.xlu0 %4134 }
 0xb52   : > { %3955 = vmatpush3.bf16.msra.mxu0 %v1803_v56  ;;  %3961 = vmatpush3.bf16.msra.mxu1 %v4185_v63  ;;  %v4137_v36 = vunpack.i.h.bf16 %v4135_v34  ;;  %v4136_v59 = vunpack.i.l.bf16 %v4135_v34  ;;  %v4210_v63 = vld [vmem:[#allocation10 + $0x4c] ss:$16 sps:$4 sm:$0xff]   ;;  %v4242_v34 = vld [vmem:[#allocation11 + $0xc0] sm:$0xff]  }
 0xb53   : > { %3962 = vmatprep.subr.bf16.mxu1 %v4186_v2  ;;  %2355 = vmatprep.subr.bf16.mxu0 %v4195_v18  ;;  %v4226_v18 = vld [vmem:[#allocation10 + $0xa8] ss:$16 sps:$4 sm:$0xff]  }
 0xb54   : > { %v4366_v43 = vpop.eup %4365 }
 0xb55   : > { %v1751_v46 = vmul.f32 %v4366_v43, %v4358_v47  ;;  %v4125_v29 = vpop.permute.xlu1 %4124  ;;  %v4196_v43 = vld [vmem:[#allocation10 + $0x8] ss:$16 sps:$4 sm:$0xff]  }
 0xb56   : > { %3963 = vmatpush3.bf16.msra.mxu1 %v4186_v2  ;;  %v4127_v32 = vunpack.i.h.bf16 %v4125_v29  ;;  %v4126_v33 = vunpack.i.l.bf16 %v4125_v29  ;;  %v4205_v2 = vld [vmem:[#allocation10 + $0x40] ss:$16 sps:$4 sm:$0xff]  }
 0xb57   : > { %3964 = vmatprep.subr.bf16.mxu1 %v4187_v3  ;;  %v4235_v29 = vld [vmem:[#allocation10 + $0xe0] ss:$16 sps:$4 sm:$0xff]  }
 0xb58   : > { %v4368_v45 = vpop.eup %4367  ;;  %v1898_v35 = vsel %vm871_vm1, %v5197_v0, %v4127_v32  ;;  %v1897_v39 = vsel %vm871_vm1, %v5195_v8, %v4126_v33  ;;  %v4238_v32 = vld [vmem:[#allocation10 + $0xe8] ss:$16 sps:$4 sm:$0xff]   ;;  %v4241_v33 = vld [vmem:[#allocation11 + $0x40] sm:$0xff]  }
 0xb59   : > { %v1752_v57 = vmul.f32 %v4368_v45, %v4360_v49  ;;  %v4130_v37 = vpop.permute.xlu1 %4129  ;;  %v1902_v42 = vsel %vm1901_vm3, %v1897_v39, %v4136_v59  ;;  %v1903_v44 = vsel %vm1901_vm3, %v1898_v35, %v4137_v36  ;;  %v3583_v35 = vld [vmem:[%s5605_s2 + $0x2] ss:$0 sm:$0xff] }
 0xb5a   : > { %3965 = vmatpush3.bf16.msra.mxu1 %v4187_v3  ;;  %v4132_v8 = vunpack.i.h.bf16 %v4130_v37  ;;  %v4131_v50 = vunpack.i.l.bf16 %v4130_v37  ;;  %v4208_v3 = vld [vmem:[#allocation10 + $0x48] ss:$16 sps:$4 sm:$0xff]  }
 0xb5b   : > { %v1754_v58 = vpack.c.bf16 %v1752_v57, %v1751_v46  ;;  %3966 = vmatprep.subr.bf16.mxu1 %v4188_v4  ;;  %v4204_v46 = vld [vmem:[#allocation10 + $0x2c] ss:$16 sps:$4 sm:$0xff]   ;;  %v4199_v57 = vld [vmem:[#allocation10 + $0x20] ss:$16 sps:$4 sm:$0xff]  }
 0xb5c   : > { %v1900_v62 = vsel %vm871_vm1, %v5203_v23, %v4132_v8  ;;  %v1899_v53 = vsel %vm871_vm1, %v5201_v20, %v4131_v50  ;;  %v4201_v23 = vld [vmem:[#allocation10 + $0x24] ss:$16 sps:$4 sm:$0xff]   ;;  %v4202_v20 = vld [vmem:[#allocation10 + $0x28] ss:$16 sps:$4 sm:$0xff]  }
 0xb5d   : > { %3957 = vmatmul.mubr.msk.bf16.vlgmr.msra.gmra.mrb[40].mxu0 %vm970_vm2, %v1754_v58  ;;  %v4140_v49 = vpop.permute.xlu1 %4139  ;;  %v4207_v58 = vld [vmem:[#allocation10 + $0x44] ss:$16 sps:$4 sm:$0xff]  }
 0xb5e   : > { %2387 = vmatprep.mubr.bf16.mxu0 %v4700_v24  ;;  %3967 = vmatpush3.bf16.msra.mxu1 %v4188_v4  ;;  %v4142_v51 = vunpack.i.h.bf16 %v4140_v49  ;;  %v4141_v52 = vunpack.i.l.bf16 %v4140_v49  ;;  %v4213_v4 = vld [vmem:[#allocation10 + $0x64] ss:$16 sps:$4 sm:$0xff]  }
 0xb5f   : > { %3968 = vmatprep.subr.bf16.mxu1 %v4189_v7  ;;  %2356 = vmatpush1.bf16.msra.mxu0 %v4193_v17  ;;  %v4223_v17 = vld [vmem:[#allocation10 + $0xa0] ss:$16 sps:$4 sm:$0xff]  }
 0xb60   : > { %v1904_v30 = vsel %vm1901_vm3, %v1899_v53, %v4141_v52  ;;  %v1905_v31 = vsel %vm1901_vm3, %v1900_v62, %v4142_v51  ;;  %2357 = vmatprep.subr.bf16.mxu0 %v4201_v23 }
 0xb62   : > { %3969 = vmatpush3.bf16.msra.mxu1 %v4189_v7  ;;  %v4216_v7 = vld [vmem:[#allocation10 + $0x6c] ss:$16 sps:$4 sm:$0xff]  }
 0xb63   : > { %3970 = vmatprep.subr.bf16.mxu1 %v4190_v9  ;;  %2358 = vmatpush1.bf16.msra.mxu0 %v4199_v57 }
 0xb64   : > { %2359 = vmatprep.subr.bf16.mxu0 %v4207_v58 }
 0xb66   : > { %3971 = vmatpush3.bf16.msra.mxu1 %v4190_v9  ;;  %v4211_v9 = vld [vmem:[#allocation10 + $0x60] ss:$16 sps:$4 sm:$0xff]  }
 0xb67   : > { %3972 = vmatprep.subr.bf16.mxu1 %v4191_v10  ;;  %2360 = vmatpush1.bf16.msra.mxu0 %v4205_v2 }
 0xb68   : > { %2361 = vmatprep.subr.bf16.mxu0 %v4213_v4 }
 0xb6a   : > { %3973 = vmatpush3.bf16.msra.mxu1 %v4191_v10  ;;  %v4214_v10 = vld [vmem:[#allocation10 + $0x68] ss:$16 sps:$4 sm:$0xff]  }
 0xb6b   : > { %3974 = vmatprep.subr.bf16.mxu1 %v4192_v16  ;;  %2362 = vmatpush1.bf16.msra.mxu0 %v4211_v9 }
 0xb6e   : > { %3975 = vmatpush3.bf16.msra.mxu1 %v4192_v16  ;;  %v4228_v16 = vld [vmem:[#allocation10 + $0xac] ss:$16 sps:$4 sm:$0xff]  }
 0xb6f   : > { %2408 = vmatprep.subr.bf16.mxu1 %v4198_v5  ;;  %v4231_v5 = vld [vmem:[#allocation10 + $0xc4] ss:$16 sps:$4 sm:$0xff]  }
 0xc24   : > { %v1795_v11 = vpop.f32.mrb[28].mxu1 }
 0xc25   : > { %v3952_v21 = vpop.f32.mrb[29].mxu1 }
 0xc26   : > { %v1798_v14 = vpop.f32.mrb[30].mxu1  ;;  %v4219_v21 = vld [vmem:[#allocation10 + $0x84] ss:$16 sps:$4 sm:$0xff]  }
 0xc27   : > { %v4143_v1 = vpack.i.bf16 %v1798_v14, %v1795_v11  ;;  %v3953_v15 = vpop.f32.mrb[31].mxu1  ;;  %v4217_v11 = vld [vmem:[#allocation10 + $0x80] ss:$16 sps:$4 sm:$0xff]   ;;  %v4220_v14 = vld [vmem:[#allocation10 + $0x88] ss:$16 sps:$4 sm:$0xff]   ;;  %2363 = vmatprep.subr.bf16.mxu0 %v4219_v21 }
 0xc28   : > { %v4225_v15 = vld [vmem:[#allocation10 + $0xa4] ss:$16 sps:$4 sm:$0xff]   ;;  %2364 = vmatpush1.bf16.msra.mxu0 %v4217_v11 }
 0xc29   : > { %4144 = vrot.lane.b32.xlu0 %v4143_v1, %s4703_s17  ;;  %v4222_v1 = vld [vmem:[#allocation10 + $0x8c] ss:$16 sps:$4 sm:$0xff]   ;;  %2365 = vmatprep.subr.bf16.mxu0 %v4225_v15 }
 0xc2c   : > { %2366 = vmatpush1.bf16.msra.mxu0 %v4223_v17 }
 0xc2d   : > { %2367 = vmatprep.subr.bf16.mxu0 %v4231_v5 }
 0xc30   : > { %v1842_v22 = vpop.f32.mrb[40].mxu0 }
 0xc31   : > { %v3958_v25 = vpop.f32.mrb[41].mxu0 }
 0xc32   : > { %v1845_v41 = vpop.f32.mrb[42].mxu0  ;;  %v4229_v25 = vld [vmem:[#allocation10 + $0xc0] ss:$16 sps:$4 sm:$0xff]  }
 0xc33   : > { %v4148_v26 = vpack.i.bf16 %v1845_v41, %v1842_v22  ;;  %v3959_v27 = vpop.f32.mrb[43].mxu0  ;;  %v4234_v22 = vld [vmem:[#allocation10 + $0xcc] ss:$16 sps:$4 sm:$0xff]   ;;  %v4232_v41 = vld [vmem:[#allocation10 + $0xc8] ss:$16 sps:$4 sm:$0xff]   ;;  %2368 = vmatpush1.bf16.msra.mxu0 %v4229_v25 }
 0xc34   : > { %v4240_v27 = vld [vmem:[#allocation10 + $0xec] ss:$16 sps:$4 sm:$0xff]  }
 0xc35   : > { %4149 = vrot.lane.b32.xlu1 %v4148_v26, %s4703_s17  ;;  %v4237_v26 = vld [vmem:[#allocation10 + $0xe4] ss:$16 sps:$4 sm:$0xff]   ;;  %s4573_s17 = sshll.u32 %s4706_s10, 4  ;;  %s4574_s17 = int_to_ptr.vmem [resolvable:$false] %s4573_s17 }
 0xc36   : > { %2369 = vmatprep.subr.bf16.mxu0 %v4237_v26  ;;  %s4575_s5 = scalar_lea.vmem %s4574_s17, 1024  ;;  %p4576_p0 = scmp.lt.s32.totalorder %s5515_s6, %s4574_s17 }
 0xc37   : > { %2370 = vmatpush1.bf16.msra.mxu0 %v4235_v29  ;;  %p4577_p5 = scmp.lt.s32.totalorder %s4575_s5, %s4569_s26 }
 0xc38   : > { %3750 = vmatprep.subr.bf16.mxu0 %v4241_v33 }
 0xc39   : > { %p4578_p7 = por %p4577_p5, %p4576_p0 }
 0xc3b   : > { %p4579_p8 = pnand %p4578_p7, %p4572_p9 }
 0xc9b   : > { %v4145_v61 = vpop.permute.xlu0 %4144 }
 0xc9c   : > { %v4147_v38 = vunpack.i.h.bf16 %v4145_v61  ;;  %v4146_v40 = vunpack.i.l.bf16 %v4145_v61 }
 0xc9e   : > { %v1907_v47 = vsel %vm1906_vm4, %v1902_v42, %v4146_v40  ;;  %v1908_v48 = vsel %vm1906_vm4, %v1903_v44, %v4147_v38 }
 0xc9f   : > { %v1911_v0 = vpack.c.bf16 %v1908_v48, %v1907_v47 }
 0xca1   : > { %3976 = vmatprep.mubr.bf16.mxu1 %v1911_v0 }
 0xca7   : > { %v4150_v60 = vpop.permute.xlu1 %4149 }
 0xca8   : > { %v4152_v54 = vunpack.i.h.bf16 %v4150_v60  ;;  %v4151_v28 = vunpack.i.l.bf16 %v4150_v60 }
 0xcaa   : > { %v1910_v55 = vsel %vm1906_vm4, %v1905_v31, %v4152_v54  ;;  %v1909_v56 = vsel %vm1906_vm4, %v1904_v30, %v4151_v28 }
 0xcab   : > { %v1912_v45 = vpack.c.bf16 %v1910_v55, %v1909_v56 }
 0xcad   : > { %3977 = vmatmul.mubr.bf16.vlgmr.msra.gmra.mrb[32].mxu1 %v1912_v45 }
 0xcae   : > { %2409 = vmatpush1.bf16.msra.mxu1 %v4196_v43  ;;  %2440 = vmatprep.mubr.bf16.mxu1 %v4700_v24 }
 0xcaf   : > { %2410 = vmatprep.subr.bf16.mxu1 %v4204_v46 }
 0xcb2   : > { %2411 = vmatpush1.bf16.msra.mxu1 %v4202_v20 }
 0xcb3   : > { %2412 = vmatprep.subr.bf16.mxu1 %v4210_v63 }
 0xcb6   : > { %2413 = vmatpush1.bf16.msra.mxu1 %v4208_v3 }
 0xcb7   : > { %2414 = vmatprep.subr.bf16.mxu1 %v4216_v7 }
 0xcba   : > { %2415 = vmatpush1.bf16.msra.mxu1 %v4214_v10 }
 0xcbb   : > { %2416 = vmatprep.subr.bf16.mxu1 %v4222_v1 }
 0xcbe   : > { %2417 = vmatpush1.bf16.msra.mxu1 %v4220_v14 }
 0xcbf   : > { %2418 = vmatprep.subr.bf16.mxu1 %v4228_v16 }
 0xcc2   : > { %2419 = vmatpush1.bf16.msra.mxu1 %v4226_v18 }
 0xcc3   : > { %2420 = vmatprep.subr.bf16.mxu1 %v4234_v22 }
 0xcc6   : > { %2421 = vmatpush1.bf16.msra.mxu1 %v4232_v41 }
 0xcc7   : > { %2422 = vmatprep.subr.bf16.mxu1 %v4240_v27 }
 0xcca   : > { %2423 = vmatpush1.bf16.msra.mxu1 %v4238_v32 }
 0xccb   : > { %3778 = vmatprep.subr.bf16.mxu1 %v4242_v34 }
 0xd80   : > { %v3978_v39 = vpop.f32.mrb[32].mxu1 }
 0xd81   : > { %v2024_v36 = vadd.f32 %v3978_v39, %v3583_v35  ;;  %v2015_v59 = vpop.f32.mrb[33].mxu1 }
 0xd82   : > { %v2016_v61 = vadd.f32 %v3583_v35, %v2015_v59  ;;  %v3979_v37 = vpop.f32.mrb[34].mxu1 }
 0xd83   : > { %v5339_v38 = vadd.f32 %v2024_v36, %v5118_v19  ;;  %v2027_v40 = vadd.f32 %v3979_v37, %v3583_v35  ;;  %v2018_v42 = vpop.f32.mrb[35].mxu1 }
 0xd84   : > { %v5342_v44 = vadd.f32 %v2016_v61, %v5111_v12  ;;  %v2019_v47 = vadd.f32 %v3583_v35, %v2018_v42 }
 0xd85   : > { %v2037_v48 = vrot.slane %v5339_v38, 7  ;;  %v2046_v0 = vrot.slane %v5339_v38, 6  ;;  %v5347_v49 = vadd.f32 %v2027_v40, %v5120_v6 }
 0xd86   : > { %v2036_v19 = vrot.slane %v5342_v44, 7  ;;  %v2043_v8 = vrot.slane %v5342_v44, 6  ;;  %v5352_v50 = vadd.f32 %v2019_v47, %v5113_v13 }
 0xd87   : > { %v2065_v12 = vsel %vm2063_vm6, %v5339_v38, %v2037_v48  ;;  %v2047_v51 = vrot.slane %v5347_v49, 6  ;;  %v2056_v52 = vrot.slane %v5347_v49, 5  ;;  %v2060_v60 = vrot.slane %v5347_v49, 4 }
 0xd88   : > { %v5360_v6 = vsel %vm2042_vm5, %v2065_v12, %v2046_v0  ;;  %v2064_v62 = vsel %vm2063_vm6, %v5342_v44, %v2036_v19  ;;  %v2044_v53 = vrot.slane %v5352_v50, 6  ;;  %v2055_v13 = vrot.slane %v5352_v50, 5 }
 0xd89   : > { %v2083_v54 = vrot.slane %v5360_v6, 1  ;;  %v2066_v28 = vsel %vm2042_vm5, %v2064_v62, %v2043_v8  ;;  %v5369_v30 = vsel %vm2042_vm5, %v2046_v0, %v2047_v51  ;;  %v2069_v31 = vsel %vm2042_vm5, %v2047_v51, %v2056_v52 }
 0xd8a   : > { %v2078_v55 = vrot.slane %v2066_v28, 1  ;;  %v2097_v56 = vrot.slane %v2066_v28, 2  ;;  %v2116_v43 = vrot.slane %v2066_v28, 3  ;;  %v2072_v45 = vsel %vm2070_vm7, %v2069_v31, %v2060_v60 }
 0xd8b   : > { %v2086_v23 = vrot.slane %v2072_v45, 1  ;;  %v2045_v46 = vsel %vm2042_vm5, %v2043_v8, %v2044_v53  ;;  %v2059_v57 = vrot.slane %v5352_v50, 4  ;;  %v2068_v20 = vsel %vm2042_vm5, %v2044_v53, %v2055_v13 }
 0xd8c   : > { %v2079_v58 = vrot.slane %v2045_v46, 1  ;;  %v2098_v63 = vrot.slane %v2045_v46, 2  ;;  %v2117_v2 = vrot.slane %v2045_v46, 3  ;;  %v2135_v3 = vrot.slane %v2066_v28, 4 }
 0xd8d   : > { %v2071_v4 = vsel %vm2070_vm7, %v2068_v20, %v2059_v57  ;;  %v2136_v7 = vrot.slane %v2045_v46, 4  ;;  %v2084_v9 = vrot.slane %v5369_v30, 1  ;;  %v2102_v10 = vrot.slane %v5360_v6, 2 }
 0xd8e   : > { %v2081_v11 = vrot.slane %v2071_v4, 1  ;;  %v2100_v21 = vrot.slane %v2071_v4, 2  ;;  %v2119_v14 = vrot.slane %v2071_v4, 3  ;;  %v2080_v1 = vsel %vm2077_vm8, %v2078_v55, %v2079_v58 }
 0xd8f   : > { %v2092_v15 = vadd.f32 %v2080_v1, %v2066_v28  ;;  %v2099_v16 = vsel %vm2096_vm9, %v2097_v56, %v2098_v63  ;;  %v2118_v17 = vsel %vm2115_vm10, %v2116_v43, %v2117_v2  ;;  %v2137_v18 = vsel %vm2134_vm11, %v2135_v3, %v2136_v7  ;;  %v4245_v3 = vld [vmem:[#allocation11 + $0x48] sm:$0xff]   ;;  %v4256_v1 = vld [vmem:[#allocation11 + $0x98] sm:$0xff]  }
 0xd90   : > { %v2082_v5 = vsel %vm2077_vm8, %v2079_v58, %v2081_v11  ;;  %v2101_v22 = vsel %vm2096_vm9, %v2098_v63, %v2100_v21  ;;  %v2120_v25 = vsel %vm2115_vm10, %v2117_v2, %v2119_v14  ;;  %v2138_v41 = vrot.slane %v2071_v4, 4  ;;  %v4243_v63 = vld [vmem:[#allocation11] sm:$0xff]   ;;  %v4246_v4 = vld [vmem:[#allocation11 + $0xc8] sm:$0xff]   ;;  %v4252_v11 = vld [vmem:[#allocation11 + $0x90] sm:$0xff]  }
 0xd91   : > { %v2093_v26 = vadd.f32 %v2082_v5, %v2045_v46  ;;  %v2111_v27 = vadd.f32 %v2099_v16, %v2092_v15  ;;  %v2085_v29 = vsel %vm2077_vm8, %v2083_v54, %v2084_v9  ;;  %v2087_v32 = vsel %vm2077_vm8, %v2084_v9, %v2086_v23  ;;  %v4244_v2 = vld [vmem:[#allocation11 + $0x80] sm:$0xff]   ;;  %v4250_v9 = vld [vmem:[#allocation11 + $0xd0] sm:$0xff]   ;;  %v4253_v21 = vld [vmem:[#allocation11 + $0x58] sm:$0xff]  }
 0xd92   : > { %v2139_v33 = vsel %vm2134_vm11, %v2136_v7, %v2138_v41  ;;  %v2094_v34 = vadd.f32 %v2085_v29, %v5360_v6  ;;  %v2095_v35 = vadd.f32 %v2087_v32, %v5369_v30  ;;  %v2103_v39 = vrot.slane %v5369_v30, 2  ;;  %v4248_v7 = vld [vmem:[#allocation11 + $0x88] sm:$0xff]   ;;  %v4254_v14 = vld [vmem:[#allocation11 + $0xd8] sm:$0xff]   ;;  %v4257_v15 = vld [vmem:[#allocation11 + $0x60] sm:$0xff]  }
 0xd93   : > { %v2112_v36 = vadd.f32 %v2101_v22, %v2093_v26  ;;  %v2130_v59 = vadd.f32 %v2118_v17, %v2111_v27  ;;  %v2105_v61 = vrot.slane %v2072_v45, 2  ;;  %v2121_v37 = vrot.slane %v5360_v6, 3  ;;  %v4258_v16 = vld [vmem:[#allocation11 + $0xe0] sm:$0xff]   ;;  %v4261_v5 = vld [vmem:[#allocation11 + $0x68] sm:$0xff]   ;;  %v4265_v26 = vld [vmem:[#allocation11 + $0x70] sm:$0xff]  }
 0xd94   : > { %v2104_v40 = vsel %vm2096_vm9, %v2102_v10, %v2103_v39  ;;  %v2122_v42 = vrot.slane %v5369_v30, 3  ;;  %v2124_v47 = vrot.slane %v2072_v45, 3  ;;  %v2140_v48 = vrot.slane %v5360_v6, 4  ;;  %v4251_v10 = vld [vmem:[#allocation11 + $0x10] sm:$0xff]   ;;  %v4259_v17 = vld [vmem:[#allocation11 + $0x20] sm:$0xff]   ;;  %v4262_v22 = vld [vmem:[#allocation11 + $0xe8] sm:$0xff]  }
 0xd95   : > { %v2131_v0 = vadd.f32 %v2120_v25, %v2112_v36  ;;  %v2149_v19 = vadd.f32 %v2137_v18, %v2130_v59  ;;  %v2106_v8 = vsel %vm2096_vm9, %v2103_v39, %v2105_v61  ;;  %v2113_v12 = vadd.f32 %v2104_v40, %v2094_v34  ;;  %v4260_v18 = vld [vmem:[#allocation11 + $0xa0] sm:$0xff]   ;;  %v4263_v25 = vld [vmem:[#allocation11 + $0x28] sm:$0xff]   ;;  %v4266_v27 = vld [vmem:[#allocation11 + $0xf0] sm:$0xff]  }
 0xd96   : > { %v2114_v51 = vadd.f32 %v2106_v8, %v2095_v35  ;;  %v2123_v52 = vsel %vm2115_vm10, %v2121_v37, %v2122_v42  ;;  %v2125_v60 = vsel %vm2115_vm10, %v2122_v42, %v2124_v47  ;;  %v2141_v62 = vrot.slane %v5369_v30, 4  ;;  %v4264_v41 = vld [vmem:[#allocation11 + $0xa8] sm:$0xff]   ;;  %v4267_v29 = vld [vmem:[#allocation11 + $0x30] sm:$0xff]   ;;  %v4270_v34 = vld [vmem:[#allocation11 + $0xf8] sm:$0xff]  }
 0xd97   : > { %v2150_v53 = vadd.f32 %v2139_v33, %v2131_v0  ;;  %v2153_v13 = vmul.f32 0.2, %v2149_v19  ;;  %v2132_v54 = vadd.f32 %v2123_v52, %v2113_v12  ;;  %v2143_v28 = vrot.slane %v2072_v45, 4  ;;  %v4268_v32 = vld [vmem:[#allocation11 + $0xb0] sm:$0xff]   ;;  %v4269_v33 = vld [vmem:[#allocation11 + $0x78] sm:$0xff]   ;;  %v4273_v36 = vld [vmem:[#allocation13 + $0x40] sm:$0xff]  }
 0xd98   : > { %v2133_v31 = vadd.f32 %v2125_v60, %v2114_v51  ;;  %v2142_v55 = vsel %vm2134_vm11, %v2140_v48, %v2141_v62  ;;  %v4271_v35 = vld [vmem:[#allocation11 + $0x38] sm:$0xff]   ;;  %v4275_v59 = vld [vmem:[#allocation13 + $0x80] sm:$0xff]  }
 0xd99   : > { %v2154_v6 = vmul.f32 0.2, %v2150_v53  ;;  %v5402_v56 = vsub.f32 %v5342_v44, %v2153_v13  ;;  %v2144_v43 = vsel %vm2134_vm11, %v2141_v62, %v2143_v28  ;;  %v2151_v23 = vadd.f32 %v2142_v55, %v2132_v54  ;;  %v4272_v39 = vld [vmem:[#allocation11 + $0xb8] sm:$0xff]  }
 0xd9a   : > { %v2152_v46 = vadd.f32 %v2144_v43, %v2133_v31  ;;  %v5421_v43 = vld [vmem:[%s5062_s20] sm:$0xff] }
 0xd9b   : > { %v5406_v57 = vsub.f32 %v5352_v50, %v2154_v6  ;;  %v2155_v20 = vmul.f32 0.2, %v2151_v23  ;;  %v4247_v50 = vld [vmem:[#allocation11 + $0x8] sm:$0xff]   ;;  %v4274_v6 = vld [vmem:[#allocation13] sm:$0xff]  }
 0xd9c   : > { %v2156_v30 = vmul.f32 0.2, %v2152_v46  ;;  %v5424_v23 = vld [vmem:[%s5062_s20 + $0x8] sm:$0xff] }
 0xd9d   : > { %v2161_v58 = vpack.c.bf16 %v5406_v57, %v5402_v56  ;;  %v5411_v45 = vsub.f32 %v5339_v38, %v2155_v20  ;;  %v4249_v38 = vld [vmem:[#allocation11 + $0x50] sm:$0xff]   ;;  %v4276_v46 = vld [vmem:[#allocation13 + $0x48] sm:$0xff]  }
 0xd9e   : > { %v5414_v44 = vsub.f32 %v5347_v49, %v2156_v30  ;;  %v4278_v20 = vld [vmem:[#allocation13 + $0x88] sm:$0xff]  }
 0xd9f   : > { %2388 = vmatmul.mubr.bf16.vlgmr.msra.gmra.mrb[44].mxu0 %v2161_v58  ;;  %2441 = vmatmul.mubr.bf16.vlgmr.msra.gmra.mrb[36].mxu1 %v2161_v58 }
 0xda0   : > { %2397 = vmatprep.mubr.bf16.mxu0 %v4700_v24  ;;  %2450 = vmatprep.mubr.bf16.mxu1 %v4700_v24  ;;  %v2162_v49 = vpack.c.bf16 %v5414_v44, %v5411_v45  ;;  %v4255_v24 = vld [vmem:[#allocation11 + $0x18] sm:$0xff]  }
 0xda1   : > { %3751 = vmatpush3.bf16.msra.mxu0 %v4243_v63  ;;  %3779 = vmatpush3.bf16.msra.mxu1 %v4244_v2 }
 0xda2   : > { %3752 = vmatprep.subr.bf16.mxu0 %v4245_v3  ;;  %3780 = vmatprep.subr.bf16.mxu1 %v4246_v4  ;;  %v2989_v3 = vrot.slane %v5421_v43, 1  ;;  %v2990_v4 = vrot.slane %v5424_v23, 1 }
 0xda5   : > { %3753 = vmatpush3.bf16.msra.mxu0 %v4247_v50  ;;  %3781 = vmatpush3.bf16.msra.mxu1 %v4248_v7 }
 0xda6   : > { %3754 = vmatprep.subr.bf16.mxu0 %v4249_v38  ;;  %3782 = vmatprep.subr.bf16.mxu1 %v4250_v9  ;;  %v4277_v38 = vld [vmem:[#allocation13 + $0x8] sm:$0xff]   ;;  %v4279_v9 = vld [vmem:[#allocation13 + $0x50] sm:$0xff]  }
 0xda7   : > { %2398 = vmatmul.mubr.bf16.gmra.mrb[48].mxu0 %v2162_v49  ;;  %2451 = vmatmul.mubr.bf16.gmra.mrb[40].mxu1 %v2162_v49  ;;  %v4281_v49 = vld [vmem:[#allocation13 + $0x90] sm:$0xff]  }
 0xda9   : > { %3755 = vmatpush3.bf16.msra.mxu0 %v4251_v10  ;;  %3783 = vmatpush3.bf16.msra.mxu1 %v4252_v11 }
 0xdaa   : > { %3756 = vmatprep.subr.bf16.mxu0 %v4253_v21  ;;  %3784 = vmatprep.subr.bf16.mxu1 %v4254_v14 }
 0xdad   : > { %3757 = vmatpush3.bf16.msra.mxu0 %v4255_v24  ;;  %3785 = vmatpush3.bf16.msra.mxu1 %v4256_v1 }
 0xdae   : > { %3758 = vmatprep.subr.bf16.mxu0 %v4257_v15  ;;  %3786 = vmatprep.subr.bf16.mxu1 %v4258_v16 }
 0xdb1   : > { %3759 = vmatpush3.bf16.msra.mxu0 %v4259_v17  ;;  %3787 = vmatpush3.bf16.msra.mxu1 %v4260_v18 }
 0xdb2   : > { %3760 = vmatprep.subr.bf16.mxu0 %v4261_v5  ;;  %3788 = vmatprep.subr.bf16.mxu1 %v4262_v22 }
 0xdb5   : > { %3761 = vmatpush3.bf16.msra.mxu0 %v4263_v25  ;;  %3789 = vmatpush3.bf16.msra.mxu1 %v4264_v41  ;;  %v2991_v25 = vsel %vm2077_vm8, %v2989_v3, %v2990_v4  ;;  %v3001_v41 = vsel %vm2077_vm8, %v2990_v4, %v2989_v3 }
 0xdb6   : > { %3762 = vmatprep.subr.bf16.mxu0 %v4265_v26  ;;  %3790 = vmatprep.subr.bf16.mxu1 %v4266_v27 }
 0xdb9   : > { %3763 = vmatpush3.bf16.msra.mxu0 %v4267_v29  ;;  %3791 = vmatpush3.bf16.msra.mxu1 %v4268_v32  ;;  %v4280_v29 = vld [vmem:[#allocation13 + $0x10] sm:$0xff]   ;;  %v4282_v32 = vld [vmem:[#allocation13 + $0x58] sm:$0xff]  }
 0xdba   : > { %3764 = vmatprep.subr.bf16.mxu0 %v4269_v33  ;;  %3792 = vmatprep.subr.bf16.mxu1 %v4270_v34  ;;  %v4284_v33 = vld [vmem:[#allocation13 + $0x98] sm:$0xff]   ;;  %v3004_v34 = vpack.c.bf16 %v5424_v23, %v5421_v43 }
 0xdbd   : > { %3765 = vmatpush3.bf16.msra.mxu0 %v4271_v35  ;;  %3793 = vmatpush3.bf16.msra.mxu1 %v4272_v39  ;;  %v3005_v35 = vpack.c.bf16 %v3001_v41, %v2991_v25  ;;  %v4283_v39 = vld [vmem:[#allocation13 + $0x18] sm:$0xff]  }
 0xdbe   : > { %3806 = vmatprep.subr.bf16.mxu0 %v4273_v36  ;;  %3980 = vmatprep.subr.bf16.mxu1 %v4275_v59  ;;  %v4285_v36 = vld [vmem:[#allocation13 + $0x60] sm:$0xff]  }
 0xe72   : > { %v2389_v61 = vpop.f32.mrb[44].mxu0  ;;  %v2442_v37 = vpop.f32.mrb[36].mxu1 }
 0xe73   : > { %v2391_v40 = vpop.f32.mrb[45].mxu0  ;;  %v2444_v42 = vpop.f32.mrb[37].mxu1  ;;  %v2461_v0 = vmax.f32 %v2389_v61, 0.0  ;;  %v2463_v19 = vmax.f32 %v2442_v37, 0.0  ;;  %v4286_v61 = vld [vmem:[#allocation13 + $0x20] sm:$0xff]   ;;  %v4288_v37 = vld [vmem:[#allocation13 + $0x68] sm:$0xff]  }
 0xe74   : > { %v2393_v47 = vpop.f32.mrb[46].mxu0  ;;  %v2446_v48 = vpop.f32.mrb[38].mxu1  ;;  %v2462_v60 = vmax.f32 %v2391_v40, 0.0  ;;  %v2464_v62 = vmax.f32 %v2444_v42, 0.0  ;;  %v4290_v40 = vld [vmem:[#allocation13 + $0xa8] sm:$0xff]  }
 0xe75   : > { %v2465_v8 = vmax.f32 %v2393_v47, 0.0  ;;  %v2467_v12 = vmax.f32 %v2446_v48, 0.0  ;;  %v2395_v51 = vpop.f32.mrb[47].mxu0  ;;  %v2448_v52 = vpop.f32.mrb[39].mxu1  ;;  %v4289_v42 = vld [vmem:[#allocation13 + $0x28] sm:$0xff]   ;;  %v4291_v47 = vld [vmem:[#allocation13 + $0x70] sm:$0xff]  }
 0xe76   : > { %v2466_v53 = vmax.f32 %v2395_v51, 0.0  ;;  %v2468_v13 = vmax.f32 %v2448_v52, 0.0  ;;  %v4293_v48 = vld [vmem:[#allocation13 + $0xb0] sm:$0xff]  }
 0xe77   : > { %v2477_v54 = vpack.c.bf16 %v2465_v8, %v2461_v0  ;;  %v2479_v28 = vpack.c.bf16 %v2467_v12, %v2463_v19  ;;  %v2969_v0 = vld [vmem:[%s5062_s20 + $0x10] sm:$0xff]  ;;  %v2970_v19 = vld [vmem:[%s5062_s20 + $0x18] sm:$0xff]  ;;  %v2973_v8 = vrot.slane %v5424_v23, 7  ;;  %v2979_v12 = vrot.slane %v5421_v43, 7  ;;  %s3340_s20 = sshll.u32 %s5500_s9, 4  ;;  %s5520_s20 = int_to_ptr.vmem [resolvable:$true] %s3340_s20 }
 0xe78   : > { %v2478_v31 = vpack.c.bf16 %v2466_v53, %v2462_v60  ;;  %v2480_v55 = vpack.c.bf16 %v2468_v13, %v2464_v62  ;;  %v4292_v51 = vld [vmem:[#allocation13 + $0x30] sm:$0xff]   ;;  %v2992_v52 = vrot.slane %v2969_v0, 1  ;;  %v2993_v60 = vrot.slane %v2970_v19, 1  ;;  %v4294_v62 = vld [vmem:[#allocation13 + $0x78] sm:$0xff]  }
 0xe79   : > { %v4296_v53 = vld [vmem:[#allocation13 + $0xb8] sm:$0xff]   ;;  %v2980_v13 = vsel %vm2063_vm6, %v2979_v12, %v2973_v8  ;;  %v3007_v23 = vpack.c.bf16 %v2970_v19, %v2969_v0 }
 0xe7a   : > { %v2399_v30 = vpop.f32.mrb[48].mxu0  ;;  %v2452_v58 = vpop.f32.mrb[40].mxu1  ;;  %2773 = vmatprep.mubr.bf16.mxu0 %v2478_v31  ;;  %2822 = vmatprep.mubr.bf16.mxu1 %v2480_v55  ;;  %v2994_v31 = vsel %vm2077_vm8, %v2992_v52, %v2993_v60  ;;  %v3002_v55 = vsel %vm2077_vm8, %v2993_v60, %v2992_v52 }
 0xe7b   : > { %v2401_v63 = vpop.f32.mrb[49].mxu0  ;;  %v2454_v2 = vpop.f32.mrb[41].mxu1  ;;  %2774 = vmatmul.mubr.bf16.vlgmr.msra.gmra.mrb[52].mxu0 %v2477_v54  ;;  %2823 = vmatmul.mubr.bf16.vlgmr.msra.gmra.mrb[44].mxu1 %v2479_v28  ;;  %v2469_v10 = vmax.f32 %v2399_v30, 0.0  ;;  %v2471_v11 = vmax.f32 %v2452_v58, 0.0  ;;  %v4295_v54 = vld [vmem:[#allocation13 + $0x38] sm:$0xff]   ;;  %v2987_v28 = vsel %vm2063_vm6, %v2973_v8, %v2979_v12  ;;  %v3008_v43 = vpack.c.bf16 %v3002_v55, %v2994_v31 }
 0xe7c   : > { %v2403_v50 = vpop.f32.mrb[50].mxu0  ;;  %v2456_v7 = vpop.f32.mrb[42].mxu1  ;;  %3807 = vmatpush3.bf16.msra.mxu0 %v4274_v6  ;;  %3981 = vmatpush3.bf16.msra.mxu1 %v4275_v59  ;;  %v2470_v15 = vmax.f32 %v2401_v63, 0.0  ;;  %v2472_v16 = vmax.f32 %v2454_v2, 0.0  ;;  %v4287_v59 = vld [vmem:[#allocation13 + $0xa0] sm:$0xff]   ;;  %v3003_v6 = vpack.c.bf16 %v2980_v13, %v2987_v28 }
 0xe7d   : > { %v2473_v21 = vmax.f32 %v2403_v50, 0.0  ;;  %v2475_v14 = vmax.f32 %v2456_v7, 0.0  ;;  %v2405_v24 = vpop.f32.mrb[51].mxu0  ;;  %v2458_v1 = vpop.f32.mrb[43].mxu1  ;;  %3808 = vmatprep.subr.bf16.mxu0 %v4276_v46  ;;  %3982 = vmatprep.subr.bf16.mxu1 %v4278_v20  ;;  %v2974_v46 = vrot.slane %v2970_v19, 7 }
 0xe7e   : > { %v2474_v17 = vmax.f32 %v2405_v24, 0.0  ;;  %v2476_v18 = vmax.f32 %v2458_v1, 0.0 }
 0xe7f   : > { %v2481_v5 = vpack.c.bf16 %v2473_v21, %v2469_v10  ;;  %v2483_v22 = vpack.c.bf16 %v2475_v14, %v2471_v11 }
 0xe80   : > { %v2482_v26 = vpack.c.bf16 %v2474_v17, %v2470_v15  ;;  %v2484_v27 = vpack.c.bf16 %v2476_v18, %v2472_v16  ;;  %3809 = vmatpush3.bf16.msra.mxu0 %v4277_v38  ;;  %3983 = vmatpush3.bf16.msra.mxu1 %v4278_v20  ;;  %v2981_v20 = vrot.slane %v2969_v0, 7 }
 0xe81   : > { %3810 = vmatprep.subr.bf16.mxu0 %v4279_v9  ;;  %3984 = vmatprep.subr.bf16.mxu1 %v4281_v49 }
 0xe82   : > { %2781 = vmatprep.mubr.bf16.mxu0 %v2482_v26  ;;  %2830 = vmatprep.mubr.bf16.mxu1 %v2484_v27  ;;  %v2982_v30 = vsel %vm2063_vm6, %v2981_v20, %v2974_v46  ;;  %v2988_v58 = vsel %vm2063_vm6, %v2974_v46, %v2981_v20 }
 0xe83   : > { %2782 = vmatmul.mubr.bf16.gmra.mrb[56].mxu0 %v2481_v5  ;;  %2831 = vmatmul.mubr.bf16.gmra.mrb[48].mxu1 %v2483_v22  ;;  %v3006_v63 = vpack.c.bf16 %v2982_v30, %v2988_v58 }
 0xe84   : > { %3811 = vmatpush3.bf16.msra.mxu0 %v4280_v29  ;;  %3985 = vmatpush3.bf16.msra.mxu1 %v4281_v49 }
 0xe85   : > { %3812 = vmatprep.subr.bf16.mxu0 %v4282_v32  ;;  %3986 = vmatprep.subr.bf16.mxu1 %v4284_v33 }
 0xe86   : > { %3233 = vmatprep.mubr.bf16.mxu0 %v3004_v34  ;;  %3996 = vmatprep.mubr.bf16.mxu1 %v3005_v35 }
 0xe88   : > { %3813 = vmatpush3.bf16.msra.mxu0 %v4283_v39  ;;  %3987 = vmatpush3.bf16.msra.mxu1 %v4284_v33 }
 0xe89   : > { %3814 = vmatprep.subr.bf16.mxu0 %v4285_v36  ;;  %3988 = vmatprep.subr.bf16.mxu1 %v4287_v59 }
 0xe8c   : > { %3815 = vmatpush3.bf16.msra.mxu0 %v4286_v61  ;;  %3989 = vmatpush3.bf16.msra.mxu1 %v4287_v59 }
 0xe8d   : > { %3816 = vmatprep.subr.bf16.mxu0 %v4288_v37  ;;  %3990 = vmatprep.subr.bf16.mxu1 %v4290_v40 }
 0xe90   : > { %3817 = vmatpush3.bf16.msra.mxu0 %v4289_v42  ;;  %3991 = vmatpush3.bf16.msra.mxu1 %v4290_v40 }
 0xe91   : > { %3818 = vmatprep.subr.bf16.mxu0 %v4291_v47  ;;  %3992 = vmatprep.subr.bf16.mxu1 %v4293_v48 }
 0xe94   : > { %3819 = vmatpush3.bf16.msra.mxu0 %v4292_v51  ;;  %3993 = vmatpush3.bf16.msra.mxu1 %v4293_v48 }
 0xe95   : > { %3820 = vmatprep.subr.bf16.mxu0 %v4294_v62  ;;  %3994 = vmatprep.subr.bf16.mxu1 %v4296_v53 }
 0xe98   : > { %3821 = vmatpush3.bf16.msra.mxu0 %v4295_v54  ;;  %3995 = vmatpush3.bf16.msra.mxu1 %v4296_v53 }
 0xe9b   : > { %3234 = vmatmul.mubr.bf16.vlgmr.msra.gmra.mrb[60].mxu0 %v3003_v6  ;;  %3997 = vmatmul.mubr.bf16.vlgmr.msra.gmra.mrb[52].mxu1 %v3008_v43 }
 0xe9c   : > { %3241 = vmatprep.mubr.bf16.mxu0 %v3007_v23 }
 0xea3   : > { %3242 = vmatmul.mubr.bf16.gmra.mrb[64].mxu0 %v3006_v63 }
 0xf4e   : > { %v3766_v2 = vpop.f32.mrb[52].mxu0  ;;  %v3794_v3 = vpop.f32.mrb[44].mxu1 }
 0xf4f   : > { %v3767_v4 = vpop.f32.mrb[53].mxu0  ;;  %v3795_v50 = vpop.f32.mrb[45].mxu1 }
 0xf50   : > { %v3768_v7 = vadd.f32 %v3767_v4, %v3766_v2  ;;  %v3796_v38 = vadd.f32 %v3795_v50, %v3794_v3  ;;  %v3769_v9 = vpop.f32.mrb[54].mxu0  ;;  %v3797_v49 = vpop.f32.mrb[46].mxu1 }
 0xf51   : > { %v3770_v10 = vpop.f32.mrb[55].mxu0  ;;  %v3798_v11 = vpop.f32.mrb[47].mxu1 }
 0xf52   : > { %v2825_v21 = vadd.f32 %v3796_v38, %v3768_v7  ;;  %v3771_v14 = vadd.f32 %v3770_v10, %v3769_v9  ;;  %v3799_v24 = vadd.f32 %v3798_v11, %v3797_v49 }
 0xf54   : > { %v5443_v1 = vadd.f32 %v2825_v21, %v5402_v56  ;;  %v2828_v15 = vadd.f32 %v3799_v24, %v3771_v14 }
 0xf56   : > { %v2845_v16 = vrot.slane %v5443_v1, 7  ;;  %v2851_v17 = vrot.slane %v5443_v1, 6  ;;  %v5448_v18 = vadd.f32 %v2828_v15, %v5406_v57  ;;  %v3772_v5 = vpop.f32.mrb[56].mxu0  ;;  %v3800_v22 = vpop.f32.mrb[48].mxu1 }
 0xf57   : > { %v3773_v25 = vpop.f32.mrb[57].mxu0  ;;  %v3801_v41 = vpop.f32.mrb[49].mxu1 }
 0xf58   : > { %v2871_v26 = vsel %vm2063_vm6, %v5443_v1, %v2845_v16  ;;  %v2852_v27 = vrot.slane %v5448_v18, 6  ;;  %v2863_v56 = vrot.slane %v5448_v18, 5  ;;  %v2867_v29 = vrot.slane %v5448_v18, 4  ;;  %v3775_v32 = vpop.f32.mrb[58].mxu0  ;;  %v3803_v33 = vpop.f32.mrb[50].mxu1 }
 0xf59   : > { %v2873_v34 = vsel %vm2042_vm5, %v2871_v26, %v2851_v17  ;;  %v3774_v35 = vadd.f32 %v3773_v25, %v3772_v5  ;;  %v3802_v57 = vadd.f32 %v3801_v41, %v3800_v22  ;;  %v3776_v39 = vpop.f32.mrb[59].mxu0  ;;  %v3804_v36 = vpop.f32.mrb[51].mxu1 }
 0xf5a   : > { %v2883_v59 = vrot.slane %v2873_v34, 1  ;;  %v2901_v61 = vrot.slane %v2873_v34, 2  ;;  %v2919_v37 = vrot.slane %v2873_v34, 3  ;;  %v2937_v40 = vrot.slane %v2873_v34, 4 }
 0xf5b   : > { %v2853_v42 = vsel %vm2042_vm5, %v2851_v17, %v2852_v27  ;;  %v2875_v47 = vsel %vm2042_vm5, %v2852_v27, %v2863_v56  ;;  %v2833_v48 = vadd.f32 %v3802_v57, %v3774_v35  ;;  %v3777_v0 = vadd.f32 %v3776_v39, %v3775_v32 }
 0xf5c   : > { %v2877_v19 = vsel %vm2070_vm7, %v2875_v47, %v2867_v29  ;;  %v2884_v8 = vrot.slane %v2853_v42, 1  ;;  %v2902_v12 = vrot.slane %v2853_v42, 2  ;;  %v2920_v51 = vrot.slane %v2853_v42, 3 }
 0xf5d   : > { %v2886_v52 = vrot.slane %v2877_v19, 1  ;;  %v2904_v60 = vrot.slane %v2877_v19, 2  ;;  %v2922_v62 = vrot.slane %v2877_v19, 3  ;;  %v2938_v53 = vrot.slane %v2853_v42, 4 }
 0xf5e   : > { %v2885_v13 = vsel %vm2077_vm8, %v2883_v59, %v2884_v8  ;;  %v2903_v54 = vsel %vm2096_vm9, %v2901_v61, %v2902_v12  ;;  %v2921_v28 = vsel %vm2115_vm10, %v2919_v37, %v2920_v51  ;;  %v2940_v31 = vrot.slane %v2877_v19, 4 }
 0xf5f   : > { %v2887_v55 = vsel %vm2077_vm8, %v2884_v8, %v2886_v52  ;;  %v2897_v6 = vadd.f32 %v2885_v13, %v2873_v34  ;;  %v2905_v43 = vsel %vm2096_vm9, %v2902_v12, %v2904_v60  ;;  %v2923_v23 = vsel %vm2115_vm10, %v2920_v51, %v2922_v62 }
 0xf60   : > { %v2898_v46 = vadd.f32 %v2887_v55, %v2853_v42  ;;  %v2939_v20 = vsel %vm2134_vm11, %v2937_v40, %v2938_v53  ;;  %v2941_v30 = vsel %vm2134_vm11, %v2938_v53, %v2940_v31  ;;  %v5468_v58 = vadd.f32 %v2833_v48, %v5411_v45 }
 0xf61   : > { %v2915_v63 = vadd.f32 %v2903_v54, %v2897_v6  ;;  %v3805_v2 = vadd.f32 %v3804_v36, %v3803_v33 }
 0xf62   : > { %v2916_v3 = vadd.f32 %v2905_v43, %v2898_v46  ;;  %v2846_v4 = vrot.slane %v5468_v58, 7  ;;  %v2854_v50 = vrot.slane %v5468_v58, 6 }
 0xf63   : > { %v2933_v7 = vadd.f32 %v2921_v28, %v2915_v63  ;;  %v2836_v38 = vadd.f32 %v3805_v2, %v3777_v0 }
 0xf64   : > { %v2934_v9 = vadd.f32 %v2923_v23, %v2916_v3  ;;  %v2872_v49 = vsel %vm2063_vm6, %v5468_v58, %v2846_v4 }
 0xf65   : > { %v2951_v10 = vadd.f32 %v2939_v20, %v2933_v7  ;;  %v2874_v11 = vsel %vm2042_vm5, %v2872_v49, %v2854_v50  ;;  %v5476_v21 = vadd.f32 %v2836_v38, %v5414_v44 }
 0xf66   : > { %v2952_v45 = vadd.f32 %v2941_v30, %v2934_v9  ;;  %v2888_v24 = vrot.slane %v2874_v11, 1  ;;  %v2906_v5 = vrot.slane %v2874_v11, 2  ;;  %v2924_v22 = vrot.slane %v2874_v11, 3 }
 0xf67   : > { %v2955_v14 = vmul.f32 0.2, %v2951_v10  ;;  %v2855_v15 = vrot.slane %v5476_v21, 6  ;;  %v2864_v16 = vrot.slane %v5476_v21, 5  ;;  %v2868_v25 = vrot.slane %v5476_v21, 4 }
 0xf68   : > { %v2956_v17 = vmul.f32 0.2, %v2952_v45  ;;  %v2942_v26 = vrot.slane %v2874_v11, 4 }
 0xf69   : > { %v2959_v41 = vsub.f32 %v5443_v1, %v2955_v14  ;;  %v2856_v27 = vsel %vm2042_vm5, %v2854_v50, %v2855_v15  ;;  %v2876_v44 = vsel %vm2042_vm5, %v2855_v15, %v2864_v16 }
 0xf6a   : > { %v2960_v56 = vsub.f32 %v5448_v18, %v2956_v17  ;;  %v2878_v29 = vsel %vm2070_vm7, %v2876_v44, %v2868_v25  ;;  %v2889_v32 = vrot.slane %v2856_v27, 1  ;;  %v2907_v33 = vrot.slane %v2856_v27, 2 }
 0xf6b   : > { %2963 = vst [vmem:[%s5487_s23] sm:$0xff] %v2959_v41  ;;  %v2891_v34 = vrot.slane %v2878_v29, 1  ;;  %v2909_v35 = vrot.slane %v2878_v29, 2  ;;  %v2925_v57 = vrot.slane %v2856_v27, 3  ;;  %v2927_v1 = vrot.slane %v2878_v29, 3 }
 0xf6c   : > { %2964 = vst [vmem:[%s5487_s23 + $0x8] sm:$0xff] %v2960_v56  ;;  %v2890_v39 = vsel %vm2077_vm8, %v2888_v24, %v2889_v32  ;;  %v2908_v36 = vsel %vm2096_vm9, %v2906_v5, %v2907_v33  ;;  %v2943_v59 = vrot.slane %v2856_v27, 4  ;;  %v2945_v18 = vrot.slane %v2878_v29, 4 }
 0xf6d   : > { %v2892_v61 = vsel %vm2077_vm8, %v2889_v32, %v2891_v34  ;;  %v2899_v37 = vadd.f32 %v2890_v39, %v2874_v11  ;;  %v2910_v40 = vsel %vm2096_vm9, %v2907_v33, %v2909_v35  ;;  %v2926_v42 = vsel %vm2115_vm10, %v2924_v22, %v2925_v57 }
 0xf6e   : > { %v2900_v47 = vadd.f32 %v2892_v61, %v2856_v27  ;;  %v2928_v48 = vsel %vm2115_vm10, %v2925_v57, %v2927_v1  ;;  %v2944_v0 = vsel %vm2134_vm11, %v2942_v26, %v2943_v59  ;;  %v2946_v19 = vsel %vm2134_vm11, %v2943_v59, %v2945_v18  ;;  %v3822_v8 = vpop.f32.mrb[60].mxu0  ;;  %v3998_v12 = vpop.f32.mrb[52].mxu1 }
 0xf6f   : > { %v2917_v51 = vadd.f32 %v2908_v36, %v2899_v37  ;;  %v3823_v52 = vpop.f32.mrb[61].mxu0  ;;  %v3284_v60 = vpop.f32.mrb[53].mxu1 }
 0xf70   : > { %v2918_v62 = vadd.f32 %v2910_v40, %v2900_v47  ;;  %v3824_v53 = vadd.f32 %v3823_v52, %v3822_v8  ;;  %v3825_v13 = vpop.f32.mrb[62].mxu0  ;;  %v3999_v54 = vpop.f32.mrb[54].mxu1 }
 0xf71   : > { %v2935_v28 = vadd.f32 %v2926_v42, %v2917_v51  ;;  %v3826_v31 = vpop.f32.mrb[63].mxu0  ;;  %v3287_v55 = vpop.f32.mrb[55].mxu1 }
 0xf72   : > { %v2936_v6 = vadd.f32 %v2928_v48, %v2918_v62  ;;  %v3827_v43 = vadd.f32 %v3826_v31, %v3825_v13  ;;  %v3285_v23 = vadd.f32 %v3824_v53, %v3284_v60 }
 0xf73   : > { %v2953_v46 = vadd.f32 %v2944_v0, %v2935_v28 }
 0xf74   : > { %v2954_v20 = vadd.f32 %v2946_v19, %v2936_v6  ;;  %3299 = vst [vmem:[%s5500_s9] sm:$0xff] %v3285_v23  ;;  %v3288_v30 = vadd.f32 %v3827_v43, %v3287_v55 }
 0xf75   : > { %v2957_v63 = vmul.f32 0.2, %v2953_v46 }
 0xf76   : > { %v2958_v2 = vmul.f32 0.2, %v2954_v20  ;;  %3300 = vst [vmem:[%s5500_s9 + $0x8] sm:$0xff] %v3288_v30  ;;  %v3828_v3 = vpop.f32.mrb[64].mxu0 }
 0xf77   : > { %v2961_v4 = vsub.f32 %v5468_v58, %v2957_v63  ;;  %v3829_v50 = vpop.f32.mrb[65].mxu0 }
 0xf78   : > { %v2962_v7 = vsub.f32 %v5476_v21, %v2958_v2  ;;  %v3830_v38 = vadd.f32 %v3829_v50, %v3828_v3  ;;  %v3831_v9 = vpop.f32.mrb[66].mxu0 }
 0xf79   : > { %2965 = vst [vmem:[%s5487_s23 + $0x10] sm:$0xff] %v2961_v4  ;;  %v3832_v49 = vpop.f32.mrb[67].mxu0 }
 0xf7a   : > { %2966 = vst [vmem:[%s5487_s23 + $0x18] sm:$0xff] %v2962_v7  ;;  %v3293_v58 = vadd.f32 %v3998_v12, %v3830_v38  ;;  %v3833_v10 = vadd.f32 %v3832_v49, %v3831_v9 }
 0xf7b   : > { %4582 = shalt.err (!%p4579_p8)
}
 0xf7c   : > { %s4583_s18 = scalar_lea.hbm %s5513_s28, 512  ;;  %s4587_s23 = scalar_lea.hbm %s5654_s25, 1024 }
 0xf7d   : > { %p4584_p4 = scmp.ne.s32.totalorder %s5513_s28, %s4583_s18  ;;  %p4588_p1 = scmp.lt.u32.totalorder %s5513_s28, %s5654_s25 }
 0xf7e   : > { %p4589_p11 = scmp.lt.u32.totalorder %s4587_s23, %s4583_s18  ;;  %p4591_p2 = scmp.lt.u32.totalorder %s4583_s18, %s5513_s28 }
 0xf7f   : > { %p4585_p3 = pnand %p4584_p4, %p5655_p13 }
 0xf80   : > { %p4590_p12 = por %p4589_p11, %p4588_p1 }
 0xf81   : > { %p4586_p10 = pneg %p4585_p3 }
 0xf82   : > { %p4592_p6 = por %p4591_p2, %p4590_p12 }
 0xf84   : > { %p4593_p9 = pnand %p4592_p6, %p4586_p10 }
 0xf86   : > { %4596 = shalt.err (!%p4593_p9)
}
 0xf87   : > { %s4707_s26 = smov 128   ;;  %s4708_s10 = smov 8   ;;  %3301 = vst [vmem:[%s5500_s9 + $0x10] sm:$0xff] %v3293_v58  ;;  %v3296_v11 = vadd.f32 %v3999_v54, %v3833_v10 }
 0xf88   : > { %4024 = dma.vmem_to_hbm [thread:$0]  (%p5655_p13), %s5515_s6, 512, %s5513_s28, %s3304_s22, %s4707_s26, %s4707_s26, %s4708_s10  }
 0xf89   : > { %s5656_s18 = sld [smem:[#allocation31_spill]]  ;;  %3302 = vst [vmem:[%s5500_s9 + $0x18] sm:$0xff] %v3296_v11  ;;  %s3309_s3 = scalar_lea.sflag [#allocation16], %s5049_s7 }
 0xf8a   : > { %s4597_s23 = scalar_lea.vmem %s5520_s20, 512  ;;  %s4709_s24 = smov [#allocation15]  }
 0xf8b   : > { %p4598_p0 = scmp.ne.s32.totalorder %s5520_s20, %s4597_s23  ;;  %s4601_s30 = sshll.u32 %s4709_s24, 4  ;;  %s4602_s30 = int_to_ptr.vmem [resolvable:$false] %s4601_s30 }
 0xf8c   : > { %s4603_s1 = scalar_lea.vmem %s4602_s30, 1024  ;;  %p4604_p8 = scmp.lt.s32.totalorder %s5520_s20, %s4602_s30 }
 0xf8d   : > { %p4599_p5 = pnand %p4598_p0, %p5655_p13  ;;  %p4605_p4 = scmp.lt.s32.totalorder %s4603_s1, %s4597_s23 }
 0xf8f   : > { %s5555_s27 = scalar_lea.hbm %s5656_s18, %s3695_s0  ;;  %p4600_p7 = pneg %p4599_p5 }
 0xf90   : > { %p4606_p3 = por %p4605_p4, %p4604_p8 }
 0xf92   : > { %p4607_p10 = pnand %p4606_p3, %p4600_p7 }
 0xf94   : > { %4610 = shalt.err (!%p4607_p10)
}
 0xf95   : > { %s4611_s19 = scalar_lea.hbm %s5555_s27, 512  ;;  %s4615_s6 = scalar_lea.hbm %s5656_s18, 1024 }
 0xf96   : > { %p4612_p1 = scmp.ne.s32.totalorder %s5555_s27, %s4611_s19  ;;  %p4616_p2 = scmp.lt.u32.totalorder %s5555_s27, %s5656_s18 }
 0xf97   : > { %p4617_p6 = scmp.lt.u32.totalorder %s4615_s6, %s4611_s19  ;;  %p4619_p0 = scmp.lt.u32.totalorder %s4611_s19, %s5555_s27 }
 0xf98   : > { %p4613_p11 = pnand %p4612_p1, %p5655_p13 }
 0xf99   : > { %p4618_p9 = por %p4617_p6, %p4616_p2 }
 0xf9a   : > { %p4614_p12 = pneg %p4613_p11 }
 0xf9b   : > { %p4620_p5 = por %p4619_p0, %p4618_p9 }
 0xf9d   : > { %p4621_p7 = pnand %p4620_p5, %p4614_p12 }
 0xf9f   : > { %4624 = shalt.err (!%p4621_p7)
}
 0xfa0   : > { %4025 = dma.vmem_to_hbm [thread:$0]  (%p5655_p13), %s5520_s20, 512, %s5555_s27, %s3309_s3, %s4707_s26, %s4707_s26, %s4708_s10  }
 0xfa1 PF: > { %s3355_s1 = sand.u32 1, %s4671_s13   ;;  %p5657_p8 = scmp.ne.s32.totalorder %s5642_s21, 0 }
 0xfa2   : > { %p5658_p4 = scmp.ge.s32.totalorder %s4683_s16, 2  ;;  %s3356_s17 = scalar_lea.sflag [#allocation4], %s3355_s1 }
 0xfa4   : > { %p4052_p3 = pnand %p5658_p4, %p5657_p8 }
 0xfa6   : > { %4662 = dma.done.wait (!%p4052_p3), %s3356_s17, 512  }
 0xfa7   : > { %4664 = vsyncadd (!%p4052_p3), %s3356_s17, 4294966784  ;;  %s3365_s12 = scalar_lea.sflag [#allocation16], %s3355_s1 }
 0xfa8   : > { %4666 = dma.done.wait (!%p4052_p3), %s3365_s12, 512  }
 0xfa9   : > { %4668 = vsyncadd (!%p4052_p3), %s3365_s12, 4294966784  ;;  %p32_p13 = scmp.ge.s32.totalorder %s4928_s11, 4   ;;  %s5659_s13 = smov %s4675_s14 }
 0xfaa   : > { %s5660_s14 = smov %s4679_s15  ;;  %s5661_s15 = smov %s4940_s29 }
 0xfab   : > { %s5662_s16 = smov %s4928_s11  ;;  %34 = sbr.rel (!%p32_p13) target bundleno = 20 (0x14), region = 151 }
 0xfb2   :  { %3370 = vsyncpa [#allocation3], 1 }
 0xfb3   :  { %3372 = vsyncpa [#allocation3 + $0x1], 1 }
 0xfb4   :  { %3373 = vsyncpa [#allocation6], 1 }
 0xfb5   :  { %3375 = vsyncpa [#allocation6 + $0x1], 1 }
 0xfb6   :  { %3376 = vsyncpa [#allocation9], 1 }
 0xfb7   :  { %3377 = vsyncpa [#allocation12], 1 }
 0xfb8   :  { %3378 = vsyncpa [#allocation4], 1 }
 0xfb9   :  { %3380 = vsyncpa [#allocation4 + $0x1], 1 }
 0xfba   :  { %3381 = vsyncpa [#allocation16], 1 }
 0xfbb   :  { %3383 = vsyncpa [#allocation16 + $0x1], 1 }

</bundles_post_ra>
